<compile_context>
chip_gen: v7x
topology: tpu7x:2x2x1
jax: 0.10.0
libtpu: 0.0.40
codegen_flags: <defaults>
</compile_context>

<pallas_src>
import jax
import jax.numpy as jnp
from jax.experimental import pallas as pl
from jax.experimental.pallas import tpu as pltpu


# -----------------------------------------------------------------------------
# Fused conditional-VAE forward kernel
# -----------------------------------------------------------------------------
def _cvae_kernel(x_ref, xc_ref, y_ref, eps_ref,
                 wex_ref, wexc_ref, wy_ref, be_ref,
                 wheads_ref, bheads_ref,
                 wdz_ref, bd_ref, wo_ref, bo_ref,
                 recon_ref, lat_ref):
    f32 = jnp.float32
    bf16 = jnp.bfloat16
    H = be_ref.shape[-1]
    L = lat_ref.shape[-1] // 4

    xb = x_ref[...]      # already bf16 (cast upstream, no in-kernel cast)
    xcb = xc_ref[...]
    yb = y_ref[...]

    # fused one-hot projection: single K=nc matmul feeding encoder AND decoder conditioning
    y_proj = jnp.dot(yb, wy_ref[...], preferred_element_type=f32)      # (TB, 2H)

    # --- encoder: h = relu(x@We_x + xc@We_xc + y_proj_enc + be) ---
    h = jnp.dot(xb, wex_ref[...], preferred_element_type=f32)
    h = h + jnp.dot(xcb, wexc_ref[...], preferred_element_type=f32)
    h = jnp.maximum(h + y_proj[:, :H] + be_ref[...], 0.0)

    # --- fused latent heads: one (H, 2L) matmul -> [mu | logvar] ---
    mulv = (jnp.dot(h.astype(bf16), wheads_ref[...], preferred_element_type=f32)
            + bheads_ref[...])
    mu = mulv[:, :L]
    lv = mulv[:, L:]

    # --- reparameterization (VPU/EUP) ---
    std = jnp.exp(0.5 * lv)
    z = mu + std * eps_ref[...].astype(f32)

    # lane-dense packed latents: [mu | logvar | z | zero-pad] -> width 4L (multiple of 128)
    lat_ref[...] = jnp.concatenate([mulv, z, jnp.zeros_like(z)], axis=-1)

    # --- conditional decoder ---
    hd = jnp.dot(z.astype(bf16), wdz_ref[...], preferred_element_type=f32)
    hd = jnp.maximum(hd + y_proj[:, H:] + bd_ref[...], 0.0)

    logits = (jnp.dot(hd.astype(bf16), wo_ref[...], preferred_element_type=f32)
              + bo_ref[...])
    recon_ref[...] = jax.nn.sigmoid(logits).astype(recon_ref.dtype)


# -----------------------------------------------------------------------------
# Wrapper helpers
# -----------------------------------------------------------------------------
def _round_up(n, m):
    return ((n + m - 1) // m) * m


def _pick_batch_tile(B):
    """8-aligned batch tile, capped at 256, with >= 2 grid steps once B >= 16 (v7x dual-TC)."""
    b8 = _round_up(max(B, 1), 8)
    if b8 < 16:
        return b8
    return max(8, min(256, (b8 // 2 // 8) * 8))


def _vmem_limit_bytes(TB, D, H, L, nc):
    bf, f32 = 2, 4
    weights = ((2 * D * H + nc * 2 * H + H * 2 * L + L * H + H * D) * bf
               + (H + 2 * L + H + D) * f32)
    acts = (TB * (2 * D + nc + L) + TB * D) * bf + TB * 4 * L * f32
    total = 2 * (weights + acts)          # everything double-buffered by default
    return min(max(2 * total + (4 << 20), 16 << 20), 64 << 20)


# -----------------------------------------------------------------------------
# Forward
# -----------------------------------------------------------------------------
def vae_forward(params, x, x_cond, y_onehot, eps):
    """x, x_cond: (B, C, H, W); y_onehot: (B, num_classes); eps: (B, L). bf16 preferred."""
    B = x.shape[0]
    D = x.shape[1] * x.shape[2] * x.shape[3]
    H = params["be"].shape[-1]
    L = eps.shape[-1]
    nc = y_onehot.shape[-1]
    assert (4 * L) % 128 == 0, "lane-dense latent packing assumes latent_dim % 32 == 0"

    bf16 = jnp.bfloat16
    # no-op casts when inputs already arrive as bf16 (preferred; cast upstream)
    x_flat = x.reshape(B, D).astype(bf16)
    xc_flat = x_cond.reshape(B, D).astype(bf16)
    y = y_onehot.astype(bf16)
    e = eps.astype(bf16)

    TB = _pick_batch_tile(B)
    b_pad = _round_up(B, TB)
    if b_pad != B:
        pad = ((0, b_pad - B), (0, 0))
        x_flat = jnp.pad(x_flat, pad)
        xc_flat = jnp.pad(xc_flat, pad)
        y = jnp.pad(y, pad)
        e = jnp.pad(e, pad)
    grid = (b_pad // TB,)

    def row_spec(ncols):
        # blocked along the batch axis
        return pl.BlockSpec((TB, ncols), lambda i: (i, 0))

    def const_spec(arr):
        # constant block index -> stays resident in VMEM across all grid steps
        return pl.BlockSpec(arr.shape, lambda i: (0, 0))

    in_specs = [
        row_spec(D),                    # x
        row_spec(D),                    # x_cond
        row_spec(nc),                   # y_onehot
        row_spec(L),                    # eps
        const_spec(params["we_x"]), const_spec(params["we_xc"]),
        const_spec(params["w_y"]), const_spec(params["be"]),
        const_spec(params["w_heads"]), const_spec(params["b_heads"]),
        const_spec(params["wdz"]), const_spec(params["bd"]),
        const_spec(params["wo"]), const_spec(params["bo"]),
    ]
    out_specs = (row_spec(D), row_spec(4 * L))
    out_shape = (jax.ShapeDtypeStruct((b_pad, D), bf16),        # recon (bf16 store)
                 jax.ShapeDtypeStruct((b_pad, 4 * L), jnp.float32))

    recon_flat, lat = pl.pallas_call(
        _cvae_kernel,
        grid=grid,
        in_specs=in_specs,
        out_specs=out_specs,
        out_shape=out_shape,
        compiler_params=pltpu.CompilerParams(
            dimension_semantics=("parallel",),
            vmem_limit_bytes=_vmem_limit_bytes(TB, D, H, L, nc)),
    )(x_flat, xc_flat, y, e,
      params["we_x"], params["we_xc"], params["w_y"], params["be"],
      params["w_heads"], params["b_heads"],
      params["wdz"], params["bd"], params["wo"], params["bo"])

    mu = lat[:B, 0 * L:1 * L]
    logvar = lat[:B, 1 * L:2 * L]
    z = lat[:B, 2 * L:3 * L]
    recon = recon_flat[:B].reshape(x.shape)
    return {"recon": recon, "mu": mu, "logvar": logvar, "z": z}


# -----------------------------------------------------------------------------
# Pure-JAX f32 reference (mirrors the kernel's bf16 cast points)
# -----------------------------------------------------------------------------
def vae_forward_ref(params, x, x_cond, y_onehot, eps):
    f32, bf16 = jnp.float32, jnp.bfloat16
    B = x.shape[0]
    D = x.shape[1] * x.shape[2] * x.shape[3]
    H = params["be"].shape[-1]
    L = eps.shape[-1]

    xb = x.reshape(B, D).astype(bf16).astype(f32)
    xcb = x_cond.reshape(B, D).astype(bf16).astype(f32)
    yb = y_onehot.astype(bf16).astype(f32)

    y_proj = yb @ params["w_y"].astype(f32)
    h = xb @ params["we_x"].astype(f32) + xcb @ params["we_xc"].astype(f32)
    h = jnp.maximum(h + y_proj[:, :H] + params["be"], 0.0)

    mulv = h.astype(bf16).astype(f32) @ params["w_heads"].astype(f32) + params["b_heads"]
    mu, lv = mulv[:, :L], mulv[:, L:]
    z = mu + jnp.exp(0.5 * lv) * eps.astype(bf16).astype(f32)

    hd = z.astype(bf16).astype(f32) @ params["wdz"].astype(f32)
    hd = jnp.maximum(hd + y_proj[:, H:] + params["bd"], 0.0)
    logits = hd.astype(bf16).astype(f32) @ params["wo"].astype(f32) + params["bo"]
    recon = jax.nn.sigmoid(logits)
    return {"recon": recon.reshape(x.shape), "mu": mu, "logvar": lv, "z": z}


# -----------------------------------------------------------------------------
# Deterministic parameter init (weights bf16, biases f32, fused layouts)
# -----------------------------------------------------------------------------
def init_params(key, image_shape, latent_dim, num_classes, hidden):
    C, H, W = image_shape
    D = C * H * W
    ks = jax.random.split(key, 8)

    def lin(k, fan_in, fan_out):
        scale = 1.0 / jnp.sqrt(fan_in)
        w = jax.random.uniform(k, (fan_in, fan_out), jnp.float32, -scale, scale)
        return w.astype(jnp.bfloat16)

    return {
        # encoder input weight split row-wise: [x | x_cond]
        "we_x":    lin(ks[0], D, hidden),
        "we_xc":   lin(ks[1], D, hidden),
        # fused one-hot projection: [encoder we_y | decoder wdy] along output dim
        "w_y":     jnp.concatenate([lin(ks[2], num_classes, hidden),
                                    lin(ks[6], num_classes, hidden)], axis=1),
        "be":      jnp.zeros((1, hidden), jnp.float32),
        # fused latent heads: [wmu | wlv]
        "w_heads": jnp.concatenate([lin(ks[3], hidden, latent_dim),
                                    lin(ks[4], hidden, latent_dim)], axis=1),
        "b_heads": jnp.zeros((1, 2 * latent_dim), jnp.float32),
        "wdz":     lin(ks[5], latent_dim, hidden),
        "bd":      jnp.zeros((1, hidden), jnp.float32),
        "wo":      lin(ks[7], hidden, D),
        "bo":      jnp.zeros((1, D), jnp.float32),
    }


# -----------------------------------------------------------------------------
if __name__ == "__main__":
    # small shapes implied by the module: image_shape=(4,16,16), latent_dim=32
    B, C, Hs, Ws = 2, 4, 16, 16
    latent_dim, num_classes, hidden = 32, 8, 256

    key = jax.random.PRNGKey(0)
    k_par, k_x, k_xc, k_y, k_eps = jax.random.split(key, 5)

    params = init_params(k_par, (C, Hs, Ws), latent_dim, num_classes, hidden)

    # bf16 activations produced upstream (no standalone wrapper cast op)
    x = jax.random.normal(k_x, (B, C, Hs, Ws), jnp.bfloat16)        # NCHW
    x_cond = jax.random.normal(k_xc, (B, C, Hs, Ws), jnp.bfloat16)  # NCHW
    labels = jax.random.randint(k_y, (B,), 0, num_classes)
    y_onehot = jax.nn.one_hot(labels, num_classes, dtype=jnp.bfloat16)
    # TODO(synk): eps could be generated in-kernel via pltpu.prng_random_bits if the
    # deterministic-external-noise contract is relaxed.
    eps = jax.random.normal(k_eps, (B, latent_dim), jnp.bfloat16)

    out = jax.jit(vae_forward)(params, x, x_cond, y_onehot, eps)
    jax.block_until_ready(out)

    # correctness vs pure-JAX f32 reference
    ref = vae_forward_ref(params, x, x_cond, y_onehot, eps)
    assert jnp.allclose(out["recon"].astype(jnp.float32), ref["recon"], atol=2e-2, rtol=2e-2)
    assert jnp.allclose(out["mu"], ref["mu"], atol=2e-2, rtol=2e-2)
    assert jnp.allclose(out["logvar"], ref["logvar"], atol=2e-2, rtol=2e-2)
    assert jnp.allclose(out["z"], ref["z"], atol=2e-2, rtol=2e-2)

    assert out["recon"].shape == (B, C, Hs, Ws)
    assert out["mu"].shape == (B, latent_dim)
    assert out["logvar"].shape == (B, latent_dim)
    assert out["z"].shape == (B, latent_dim)
    assert bool(jnp.all(jnp.isfinite(out["recon"].astype(jnp.float32))))
    print("KERNEL_OK")
</pallas_src>

<mosaic_0001>
module attributes {stable_mosaic.version = 11 : i64} {
  func.func @_cvae_kernel(%arg0: i32, %arg1: memref<8x1024xbf16, #tpu.memory_space<vmem>>, %arg2: memref<8x1024xbf16, #tpu.memory_space<vmem>>, %arg3: memref<8x8xbf16, #tpu.memory_space<vmem>>, %arg4: memref<8x32xbf16, #tpu.memory_space<vmem>>, %arg5: memref<1024x256xbf16, #tpu.memory_space<vmem>>, %arg6: memref<1024x256xbf16, #tpu.memory_space<vmem>>, %arg7: memref<8x512xbf16, #tpu.memory_space<vmem>>, %arg8: memref<1x256xf32, #tpu.memory_space<vmem>>, %arg9: memref<256x64xbf16, #tpu.memory_space<vmem>>, %arg10: memref<1x64xf32, #tpu.memory_space<vmem>>, %arg11: memref<32x256xbf16, #tpu.memory_space<vmem>>, %arg12: memref<1x256xf32, #tpu.memory_space<vmem>>, %arg13: memref<256x1024xbf16, #tpu.memory_space<vmem>>, %arg14: memref<1x1024xf32, #tpu.memory_space<vmem>>, %arg15: memref<8x1024xbf16, #tpu.memory_space<vmem>>, %arg16: memref<8x128xf32, #tpu.memory_space<vmem>>) attributes {dimension_semantics = [#tpu.dimension_semantics<parallel>], iteration_bounds = array<i64: 1>, scalar_prefetch = 0 : i64, scratch_operands = 0 : i64, tpu.core_type = #tpu.core_type<tc>, window_params = [{transform_indices = @transform_0, window_bounds = array<i64: 8, 1024>}, {transform_indices = @transform_1, window_bounds = array<i64: 8, 1024>}, {transform_indices = @transform_2, window_bounds = array<i64: 8, 8>}, {transform_indices = @transform_3, window_bounds = array<i64: 8, 32>}, {pipeline_mode = #tpu.pipeline_mode<synchronous>, transform_indices = @transform_4, window_bounds = array<i64: 1024, 256>}, {pipeline_mode = #tpu.pipeline_mode<synchronous>, transform_indices = @transform_5, window_bounds = array<i64: 1024, 256>}, {pipeline_mode = #tpu.pipeline_mode<synchronous>, transform_indices = @transform_6, window_bounds = array<i64: 8, 512>}, {pipeline_mode = #tpu.pipeline_mode<synchronous>, transform_indices = @transform_7, window_bounds = array<i64: 1, 256>}, {pipeline_mode = #tpu.pipeline_mode<synchronous>, transform_indices = @transform_8, window_bounds = array<i64: 256, 64>}, {pipeline_mode = #tpu.pipeline_mode<synchronous>, transform_indices = @transform_9, window_bounds = array<i64: 1, 64>}, {pipeline_mode = #tpu.pipeline_mode<synchronous>, transform_indices = @transform_10, window_bounds = array<i64: 32, 256>}, {pipeline_mode = #tpu.pipeline_mode<synchronous>, transform_indices = @transform_11, window_bounds = array<i64: 1, 256>}, {pipeline_mode = #tpu.pipeline_mode<synchronous>, transform_indices = @transform_12, window_bounds = array<i64: 256, 1024>}, {pipeline_mode = #tpu.pipeline_mode<synchronous>, transform_indices = @transform_13, window_bounds = array<i64: 1, 1024>}, {transform_indices = @transform_14, window_bounds = array<i64: 8, 1024>}, {transform_indices = @transform_15, window_bounds = array<i64: 8, 128>}]} {
    %c0 = arith.constant 0 : index
    %c0_0 = arith.constant 0 : index
    %0 = vector.load %arg1[%c0, %c0_0] : memref<8x1024xbf16, #tpu.memory_space<vmem>>, vector<8x1024xbf16>
    %c0_1 = arith.constant 0 : index
    %c0_2 = arith.constant 0 : index
    %1 = vector.load %arg2[%c0_1, %c0_2] : memref<8x1024xbf16, #tpu.memory_space<vmem>>, vector<8x1024xbf16>
    %c0_3 = arith.constant 0 : index
    %c0_4 = arith.constant 0 : index
    %2 = vector.load %arg3[%c0_3, %c0_4] : memref<8x8xbf16, #tpu.memory_space<vmem>>, vector<8x8xbf16>
    %c0_5 = arith.constant 0 : index
    %c0_6 = arith.constant 0 : index
    %3 = vector.load %arg7[%c0_5, %c0_6] : memref<8x512xbf16, #tpu.memory_space<vmem>>, vector<8x512xbf16>
    %cst = arith.constant dense<0.000000e+00> : vector<8x512xf32>
    %4 = tpu.matmul %2, %3, %cst {dimension_numbers = #tpu.dot_dimension_numbers<[1], [0], [0], [1], [0, 0, 1, 1], [], []>} : vector<8x8xbf16>, vector<8x512xbf16>, vector<8x512xf32> -> vector<8x512xf32>
    %c0_7 = arith.constant 0 : index
    %c0_8 = arith.constant 0 : index
    %5 = vector.load %arg5[%c0_7, %c0_8] : memref<1024x256xbf16, #tpu.memory_space<vmem>>, vector<1024x256xbf16>
    %cst_9 = arith.constant dense<0.000000e+00> : vector<8x256xf32>
    %6 = tpu.matmul %0, %5, %cst_9 {dimension_numbers = #tpu.dot_dimension_numbers<[1], [0], [0], [1], [0, 0, 1, 1], [], []>} : vector<8x1024xbf16>, vector<1024x256xbf16>, vector<8x256xf32> -> vector<8x256xf32>
    %c0_10 = arith.constant 0 : index
    %c0_11 = arith.constant 0 : index
    %7 = vector.load %arg6[%c0_10, %c0_11] : memref<1024x256xbf16, #tpu.memory_space<vmem>>, vector<1024x256xbf16>
    %cst_12 = arith.constant dense<0.000000e+00> : vector<8x256xf32>
    %8 = tpu.matmul %1, %7, %cst_12 {dimension_numbers = #tpu.dot_dimension_numbers<[1], [0], [0], [1], [0, 0, 1, 1], [], []>} : vector<8x1024xbf16>, vector<1024x256xbf16>, vector<8x256xf32> -> vector<8x256xf32>
    %9 = arith.addf %6, %8 : vector<8x256xf32>
    %10 = vector.extract_strided_slice %4 {offsets = [0, 0], sizes = [8, 256], strides = [1, 1]} : vector<8x512xf32> to vector<8x256xf32>
    %11 = arith.addf %9, %10 : vector<8x256xf32>
    %c0_13 = arith.constant 0 : index
    %c0_14 = arith.constant 0 : index
    %12 = vector.load %arg8[%c0_13, %c0_14] : memref<1x256xf32, #tpu.memory_space<vmem>>, vector<1x256xf32>
    %13 = vector.broadcast %12 : vector<1x256xf32> to vector<8x256xf32>
    %14 = arith.addf %11, %13 : vector<8x256xf32>
    %cst_15 = arith.constant 0.000000e+00 : f32
    %15 = vector.broadcast %cst_15 : f32 to vector<8x256xf32>
    %16 = arith.maximumf %14, %15 : vector<8x256xf32>
    %17 = arith.truncf %16 : vector<8x256xf32> to vector<8x256xbf16>
    %c0_16 = arith.constant 0 : index
    %c0_17 = arith.constant 0 : index
    %18 = vector.load %arg9[%c0_16, %c0_17] : memref<256x64xbf16, #tpu.memory_space<vmem>>, vector<256x64xbf16>
    %cst_18 = arith.constant dense<0.000000e+00> : vector<8x64xf32>
    %19 = tpu.matmul %17, %18, %cst_18 {dimension_numbers = #tpu.dot_dimension_numbers<[1], [0], [0], [1], [0, 0, 1, 1], [], []>} : vector<8x256xbf16>, vector<256x64xbf16>, vector<8x64xf32> -> vector<8x64xf32>
    %c0_19 = arith.constant 0 : index
    %c0_20 = arith.constant 0 : index
    %20 = vector.load %arg10[%c0_19, %c0_20] : memref<1x64xf32, #tpu.memory_space<vmem>>, vector<1x64xf32>
    %21 = vector.broadcast %20 : vector<1x64xf32> to vector<8x64xf32>
    %22 = arith.addf %19, %21 : vector<8x64xf32>
    %23 = vector.extract_strided_slice %22 {offsets = [0, 0], sizes = [8, 32], strides = [1, 1]} : vector<8x64xf32> to vector<8x32xf32>
    %24 = vector.extract_strided_slice %22 {offsets = [0, 32], sizes = [8, 32], strides = [1, 1]} : vector<8x64xf32> to vector<8x32xf32>
    %cst_21 = arith.constant 5.000000e-01 : f32
    %25 = vector.broadcast %cst_21 : f32 to vector<8x32xf32>
    %26 = arith.mulf %25, %24 : vector<8x32xf32>
    %27 = math.exp %26 : vector<8x32xf32>
    %c0_22 = arith.constant 0 : index
    %c0_23 = arith.constant 0 : index
    %28 = vector.load %arg4[%c0_22, %c0_23] : memref<8x32xbf16, #tpu.memory_space<vmem>>, vector<8x32xbf16>
    %29 = arith.extf %28 : vector<8x32xbf16> to vector<8x32xf32>
    %30 = arith.mulf %27, %29 : vector<8x32xf32>
    %31 = arith.addf %23, %30 : vector<8x32xf32>
    %cst_24 = arith.constant 0.000000e+00 : f32
    %32 = vector.broadcast %cst_24 : f32 to vector<8x32xf32>
    %33 = tpu.concatenate %22, %31, %32 in 1 : vector<8x64xf32>, vector<8x32xf32>, vector<8x32xf32> -> vector<8x128xf32>
    %c0_25 = arith.constant 0 : index
    %c0_26 = arith.constant 0 : index
    %34 = vector.load %arg16[%c0_25, %c0_26] : memref<8x128xf32, #tpu.memory_space<vmem>>, vector<8x128xf32>
    tpu.vector_store %arg16[%c0_25, %c0_26], %33 {strides = array<i32>} : memref<8x128xf32, #tpu.memory_space<vmem>>, vector<8x128xf32>,
    %35 = arith.truncf %31 : vector<8x32xf32> to vector<8x32xbf16>
    %c0_27 = arith.constant 0 : index
    %c0_28 = arith.constant 0 : index
    %36 = vector.load %arg11[%c0_27, %c0_28] : memref<32x256xbf16, #tpu.memory_space<vmem>>, vector<32x256xbf16>
    %cst_29 = arith.constant dense<0.000000e+00> : vector<8x256xf32>
    %37 = tpu.matmul %35, %36, %cst_29 {dimension_numbers = #tpu.dot_dimension_numbers<[1], [0], [0], [1], [0, 0, 1, 1], [], []>} : vector<8x32xbf16>, vector<32x256xbf16>, vector<8x256xf32> -> vector<8x256xf32>
    %38 = vector.extract_strided_slice %4 {offsets = [0, 256], sizes = [8, 256], strides = [1, 1]} : vector<8x512xf32> to vector<8x256xf32>
    %39 = arith.addf %37, %38 : vector<8x256xf32>
    %c0_30 = arith.constant 0 : index
    %c0_31 = arith.constant 0 : index
    %40 = vector.load %arg12[%c0_30, %c0_31] : memref<1x256xf32, #tpu.memory_space<vmem>>, vector<1x256xf32>
    %41 = vector.broadcast %40 : vector<1x256xf32> to vector<8x256xf32>
    %42 = arith.addf %39, %41 : vector<8x256xf32>
    %cst_32 = arith.constant 0.000000e+00 : f32
    %43 = vector.broadcast %cst_32 : f32 to vector<8x256xf32>
    %44 = arith.maximumf %42, %43 : vector<8x256xf32>
    %45 = arith.truncf %44 : vector<8x256xf32> to vector<8x256xbf16>
    %c0_33 = arith.constant 0 : index
    %c0_34 = arith.constant 0 : index
    %46 = vector.load %arg13[%c0_33, %c0_34] : memref<256x1024xbf16, #tpu.memory_space<vmem>>, vector<256x1024xbf16>
    %cst_35 = arith.constant dense<0.000000e+00> : vector<8x1024xf32>
    %47 = tpu.matmul %45, %46, %cst_35 {dimension_numbers = #tpu.dot_dimension_numbers<[1], [0], [0], [1], [0, 0, 1, 1], [], []>} : vector<8x256xbf16>, vector<256x1024xbf16>, vector<8x1024xf32> -> vector<8x1024xf32>
    %c0_36 = arith.constant 0 : index
    %c0_37 = arith.constant 0 : index
    %48 = vector.load %arg14[%c0_36, %c0_37] : memref<1x1024xf32, #tpu.memory_space<vmem>>, vector<1x1024xf32>
    %49 = vector.broadcast %48 : vector<1x1024xf32> to vector<8x1024xf32>
    %50 = arith.addf %47, %49 : vector<8x1024xf32>
    %51 = arith.negf %50 : vector<8x1024xf32>
    %52 = math.exp %51 : vector<8x1024xf32>
    %cst_38 = arith.constant 1.000000e+00 : f32
    %53 = vector.broadcast %cst_38 : f32 to vector<8x1024xf32>
    %54 = arith.addf %53, %52 : vector<8x1024xf32>
    %55 = arith.divf %53, %54 : vector<8x1024xf32>
    %56 = arith.truncf %55 : vector<8x1024xf32> to vector<8x1024xbf16>
    %c0_39 = arith.constant 0 : index
    %c0_40 = arith.constant 0 : index
    %57 = vector.load %arg15[%c0_39, %c0_40] : memref<8x1024xbf16, #tpu.memory_space<vmem>>, vector<8x1024xbf16>
    tpu.vector_store %arg15[%c0_39, %c0_40], %56 {strides = array<i32>} : memref<8x1024xbf16, #tpu.memory_space<vmem>>, vector<8x1024xbf16>,
    return
  }
  func.func @transform_0(%arg0: i32) -> (i32, i32) {
    %c0_i32 = arith.constant 0 : i32
    %c0_i32_0 = arith.constant 0 : i32
    return %arg0, %c0_i32 : i32, i32
  }
  func.func @transform_1(%arg0: i32) -> (i32, i32) {
    %c0_i32 = arith.constant 0 : i32
    %c0_i32_0 = arith.constant 0 : i32
    return %arg0, %c0_i32 : i32, i32
  }
  func.func @transform_2(%arg0: i32) -> (i32, i32) {
    %c0_i32 = arith.constant 0 : i32
    %c0_i32_0 = arith.constant 0 : i32
    return %arg0, %c0_i32 : i32, i32
  }
  func.func @transform_3(%arg0: i32) -> (i32, i32) {
    %c0_i32 = arith.constant 0 : i32
    %c0_i32_0 = arith.constant 0 : i32
    return %arg0, %c0_i32 : i32, i32
  }
  func.func @transform_4(%arg0: i32) -> (i32, i32) {
    %c0_i32 = arith.constant 0 : i32
    %c0_i32_0 = arith.constant 0 : i32
    %c0_i32_1 = arith.constant 0 : i32
    return %c0_i32, %c0_i32_0 : i32, i32
  }
  func.func @transform_5(%arg0: i32) -> (i32, i32) {
    %c0_i32 = arith.constant 0 : i32
    %c0_i32_0 = arith.constant 0 : i32
    %c0_i32_1 = arith.constant 0 : i32
    return %c0_i32, %c0_i32_0 : i32, i32
  }
  func.func @transform_6(%arg0: i32) -> (i32, i32) {
    %c0_i32 = arith.constant 0 : i32
    %c0_i32_0 = arith.constant 0 : i32
    %c0_i32_1 = arith.constant 0 : i32
    return %c0_i32, %c0_i32_0 : i32, i32
  }
  func.func @transform_7(%arg0: i32) -> (i32, i32) {
    %c0_i32 = arith.constant 0 : i32
    %c0_i32_0 = arith.constant 0 : i32
    %c0_i32_1 = arith.constant 0 : i32
    return %c0_i32, %c0_i32_0 : i32, i32
  }
  func.func @transform_8(%arg0: i32) -> (i32, i32) {
    %c0_i32 = arith.constant 0 : i32
    %c0_i32_0 = arith.constant 0 : i32
    %c0_i32_1 = arith.constant 0 : i32
    return %c0_i32, %c0_i32_0 : i32, i32
  }
  func.func @transform_9(%arg0: i32) -> (i32, i32) {
    %c0_i32 = arith.constant 0 : i32
    %c0_i32_0 = arith.constant 0 : i32
    %c0_i32_1 = arith.constant 0 : i32
    return %c0_i32, %c0_i32_0 : i32, i32
  }
  func.func @transform_10(%arg0: i32) -> (i32, i32) {
    %c0_i32 = arith.constant 0 : i32
    %c0_i32_0 = arith.constant 0 : i32
    %c0_i32_1 = arith.constant 0 : i32
    return %c0_i32, %c0_i32_0 : i32, i32
  }
  func.func @transform_11(%arg0: i32) -> (i32, i32) {
    %c0_i32 = arith.constant 0 : i32
    %c0_i32_0 = arith.constant 0 : i32
    %c0_i32_1 = arith.constant 0 : i32
    return %c0_i32, %c0_i32_0 : i32, i32
  }
  func.func @transform_12(%arg0: i32) -> (i32, i32) {
    %c0_i32 = arith.constant 0 : i32
    %c0_i32_0 = arith.constant 0 : i32
    %c0_i32_1 = arith.constant 0 : i32
    return %c0_i32, %c0_i32_0 : i32, i32
  }
  func.func @transform_13(%arg0: i32) -> (i32, i32) {
    %c0_i32 = arith.constant 0 : i32
    %c0_i32_0 = arith.constant 0 : i32
    %c0_i32_1 = arith.constant 0 : i32
    return %c0_i32, %c0_i32_0 : i32, i32
  }
  func.func @transform_14(%arg0: i32) -> (i32, i32) {
    %c0_i32 = arith.constant 0 : i32
    %c0_i32_0 = arith.constant 0 : i32
    return %arg0, %c0_i32 : i32, i32
  }
  func.func @transform_15(%arg0: i32) -> (i32, i32) {
    %c0_i32 = arith.constant 0 : i32
    %c0_i32_0 = arith.constant 0 : i32
    return %arg0, %c0_i32 : i32, i32
  }
}

</mosaic_0001>

<bundles_post_ra>
// kernel: vae_forward.1
= control target key start
LH: loop header
LB: loop body
LE: loop exit
PB: predicated region body
PF: predicated region fallthrough
CT: control target
= control target key end

     0   :  { %21 = vsyncpa [#allocation3], 0  ;;  %s4866_s0 = inlined_call_operand.vmem [shape: bf16[8,1024], index: 0, kind: input, shape index: {}]   ;;  %s4867_s1 = inlined_call_operand.vmem [shape: bf16[8,1024], index: 1, kind: input, shape index: {}]   ;;  %s4868_s2 = inlined_call_operand.vmem [shape: bf16[8,8], index: 2, kind: input, shape index: {}]   ;;  %s4869_s3 = inlined_call_operand.vmem [shape: bf16[8,32], index: 3, kind: input, shape index: {}]   ;;  %s4870_s4 = inlined_call_operand.hbm [shape: bf16[1024,256], index: 4, kind: input, shape index: {}]   ;;  %s4871_s5 = inlined_call_operand.hbm [shape: bf16[1024,256], index: 5, kind: input, shape index: {}]   ;;  %s4872_s6 = inlined_call_operand.vmem [shape: bf16[8,512], index: 6, kind: input, shape index: {}]   ;;  %s4873_s7 = inlined_call_operand.vmem [shape: f32[1,256], index: 7, kind: input, shape index: {}]   ;;  %s4874_s8 = inlined_call_operand.vmem [shape: bf16[256,64], index: 8, kind: input, shape index: {}]   ;;  %s4875_s9 = inlined_call_operand.vmem [shape: f32[1,64], index: 9, kind: input, shape index: {}]   ;;  %s4876_s10 = inlined_call_operand.vmem [shape: bf16[32,256], index: 10, kind: input, shape index: {}]   ;;  %s4877_s11 = inlined_call_operand.vmem [shape: f32[1,256], index: 11, kind: input, shape index: {}]   ;;  %s4878_s12 = inlined_call_operand.hbm [shape: bf16[256,1024], index: 12, kind: input, shape index: {}]   ;;  %s4879_s13 = inlined_call_operand.vmem [shape: f32[1,1024], index: 13, kind: input, shape index: {}]   ;;  %s4880_s14 = inlined_call_operand.vmem [shape: bf16[8,1024], index: 14, kind: output, shape index: {0}]   ;;  %s4881_s15 = inlined_call_operand.vmem [shape: f32[8,128], index: 15, kind: output, shape index: {1}]  }
   0x1   :  { %22 = vsyncpa [#allocation5], 0  ;;  %s4514_s18 = smov [#allocation4]   ;;  %s4515_s20 = smov [#allocation2]  }
   0x2   :  { %s48_s19 = sshll.u32 %s4514_s18, 4  ;;  %s36_s21 = sshll.u32 %s4515_s20, 4  ;;  %s49_s19 = int_to_ptr.vmem [resolvable:$true] %s48_s19  ;;  %s4604_s21 = int_to_ptr.vmem [resolvable:$true] %s36_s21 }
   0x3   :  { %s4444_s24 = scalar_lea.hbm %s4871_s5, 16384 }
   0x4   :  { %p4445_p0 = scmp.ne.s32.totalorder %s4871_s5, %s4444_s24  ;;  %p4448_p1 = scmp.lt.u32.totalorder %s4444_s24, %s4871_s5 }
   0x6   :  { %p4450_p2 = pnand %p4448_p1, %p4445_p0 }
   0x8   :  { %4453 = shalt.err (!%p4450_p2)
}
   0x9   :  { %s4454_s29 = scalar_lea.vmem %s49_s19, 16384  ;;  %p4459_p4 = scmp.lt.s32.totalorder %s49_s19, %s49_s19 }
   0xa   :  { %p4455_p3 = scmp.ne.s32.totalorder %s49_s19, %s4454_s29  ;;  %p4460_p5 = scmp.lt.s32.totalorder %s4454_s29, %s4454_s29 }
   0xc   :  { %p4461_p6 = por %p4460_p5, %p4459_p4 }
   0xe   :  { %p4462_p7 = pnand %p4461_p6, %p4455_p3 }
  0x10   :  { %4465 = shalt.err (!%p4462_p7)
}
  0x11   :  { %s4516_s30 = smov 128   ;;  %s4517_s16 = smov 8  }
  0x12   :  { %54 = dma.hbm_to_vmem [thread:$0]  %s4871_s5, 16384, %s49_s19, [#allocation5], %s4516_s30, %s4516_s30, %s4517_s16  }
  0x13   :  { %s4466_s23 = scalar_lea.hbm %s4870_s4, 16384 }
  0x14   :  { %p4467_p8 = scmp.ne.s32.totalorder %s4870_s4, %s4466_s23  ;;  %p4470_p9 = scmp.lt.u32.totalorder %s4466_s23, %s4870_s4 }
  0x16   :  { %p4472_p10 = pnand %p4470_p9, %p4467_p8 }
  0x18   :  { %4475 = shalt.err (!%p4472_p10)
}
  0x19   :  { %s4476_s28 = scalar_lea.vmem %s4604_s21, 16384  ;;  %p4481_p12 = scmp.lt.s32.totalorder %s4604_s21, %s4604_s21 }
  0x1a   :  { %p4477_p11 = scmp.ne.s32.totalorder %s4604_s21, %s4476_s28  ;;  %p4482_p13 = scmp.lt.s32.totalorder %s4476_s28, %s4476_s28 }
  0x1c   :  { %p4483_p0 = por %p4482_p13, %p4481_p12 }
  0x1e   :  { %p4484_p1 = pnand %p4483_p0, %p4477_p11 }
  0x20   :  { %4487 = shalt.err (!%p4484_p1)
}
  0x21   :  { %42 = dma.hbm_to_vmem [thread:$0]  %s4870_s4, 16384, %s4604_s21, [#allocation3], %s4516_s30, %s4516_s30, %s4517_s16  }
  0x22   :  { %s4518_s29 = smov [#allocation6]   ;;  %s4488_s22 = scalar_lea.hbm %s4878_s12, 16384 }
  0x23   :  { %s72_s17 = sshll.u32 %s4518_s29, 4  ;;  %p4489_p2 = scmp.ne.s32.totalorder %s4878_s12, %s4488_s22  ;;  %s73_s17 = int_to_ptr.vmem [resolvable:$true] %s72_s17 }
  0x24   :  { %p4492_p3 = scmp.lt.u32.totalorder %s4488_s22, %s4878_s12 }
  0x26   :  { %p4494_p4 = pnand %p4492_p3, %p4489_p2 }
  0x28   :  { %4497 = shalt.err (!%p4494_p4)
}
  0x29   :  { %s4498_s27 = scalar_lea.vmem %s73_s17, 16384  ;;  %p4503_p6 = scmp.lt.s32.totalorder %s73_s17, %s73_s17 }
  0x2a   :  { %p4499_p5 = scmp.ne.s32.totalorder %s73_s17, %s4498_s27  ;;  %p4504_p7 = scmp.lt.s32.totalorder %s4498_s27, %s4498_s27 }
  0x2c   :  { %p4505_p8 = por %p4504_p7, %p4503_p6 }
  0x2e   :  { %p4506_p9 = pnand %p4505_p8, %p4499_p5 }
  0x30   :  { %4509 = shalt.err (!%p4506_p9)
}
  0x31   :  { %s4519_s4 = smov 512   ;;  %s4520_s21 = smov 32  }
  0x32   :  { %78 = dma.hbm_to_vmem [thread:$0]  %s4878_s12, 16384, %s73_s17, [#allocation5], %s4519_s4, %s4519_s4, %s4520_s21  }
  0x33   :  { %4510 = dma.done.wait [#allocation3], 16384  }
  0x34   :  { %4511 = vsyncadd [#allocation3], 4294950912 }
  0x35   :  { %4512 = dma.done.wait [#allocation5], 32768  }
  0x36   :  { %4513 = vsyncadd [#allocation5], 4294934528  ;;  %v4521_v0 = vmov 0   ;;  %v100_v1 = vld [vmem:[%s4872_s6] sm:$0xff]  ;;  %vm116_vm0 = vcmask 1043456   ;;  %v101_v6 = vld [vmem:[%s4872_s6 + $0x8] sm:$0xff] }
  0x37   :  { %161 = vmatprep.mubr.bf16.mxu1 %v4521_v0  ;;  %v3507_v2 = vcombine.high %v100_v1, %v100_v1  ;;  %v3985_v3 = vld [vmem:[#allocation4 + $0x4] ss:$8 sps:$4 sm:$0xff]   ;;  %v3506_v4 = vcombine.low %v100_v1, %v100_v1  ;;  %v3988_v5 = vld [vmem:[#allocation4] ss:$8 sps:$4 sm:$0xff]   ;;  %v3509_v8 = vcombine.high %v101_v6, %v101_v6  ;;  %v3990_v9 = vld [vmem:[#allocation4 + $0x14] ss:$8 sps:$4 sm:$0xff]   ;;  %v3508_v10 = vcombine.low %v101_v6, %v101_v6 }
  0x38   :  { %1135 = vmatprep.subr.bf16.mxu0 %v3985_v3  ;;  %v99_v11 = vld [vmem:[%s4868_s2] sm:$0xf]  ;;  %vm112_vm1 = vcmask 64512   ;;  %v3993_v12 = vld [vmem:[#allocation4 + $0x10] ss:$8 sps:$4 sm:$0xff]   ;;  %v4671_v58 = vld [vmem:[%s4867_s1 + $0x8] sm:$0xff] }
  0x39   :  { %3510 = vmatprep.subr.msk.bf16.mxu1 %vm116_vm0, %v3507_v2  ;;  %v118_v7 = vsel %vm116_vm0, %v3506_v4, 0  ;;  %1136 = vmatpush1.bf16.msra.mxu0 %v3988_v5  ;;  %v124_v13 = vsel %vm116_vm0, %v3508_v10, 0  ;;  %v3994_v14 = vld [vmem:[#allocation4 + $0x24] ss:$8 sps:$4 sm:$0xff]   ;;  %v3996_v16 = vld [vmem:[#allocation4 + $0x20] ss:$8 sps:$4 sm:$0xff]   ;;  %v3517_v61 = vcombine.high %v4671_v58, %v4671_v58 }
  0x3a   :  { %130 = vmatpush1.bf16.msra.mxu1 %v118_v7  ;;  %1137 = vmatprep.subr.bf16.mxu0 %v3990_v9  ;;  %v3999_v15 = vld [vmem:[#allocation4 + $0x104] ss:$8 sps:$4 sm:$0xff]   ;;  %v4000_v17 = vld [vmem:[#allocation4 + $0x34] ss:$8 sps:$4 sm:$0xff]   ;;  %v3997_v18 = vld [vmem:[#allocation4 + $0x100] ss:$8 sps:$4 sm:$0xff]  }
  0x3b   :  { %3512 = vmatprep.subr.msk.bf16.mxu1 %vm116_vm0, %v3509_v8  ;;  %v4002_v19 = vld [vmem:[#allocation4 + $0x30] ss:$8 sps:$4 sm:$0xff]   ;;  %v4005_v20 = vld [vmem:[#allocation4 + $0x114] ss:$8 sps:$4 sm:$0xff]   ;;  %v4006_v21 = vld [vmem:[#allocation4 + $0x44] ss:$8 sps:$4 sm:$0xff]  }
  0x3c   :  { %v4003_v22 = vld [vmem:[#allocation4 + $0x110] ss:$8 sps:$4 sm:$0xff]   ;;  %v4008_v23 = vld [vmem:[#allocation4 + $0x40] ss:$8 sps:$4 sm:$0xff]   ;;  %v4011_v24 = vld [vmem:[#allocation4 + $0x124] ss:$8 sps:$4 sm:$0xff]  }
  0x3d   :  { %3511 = vmatmul.mubr.msk.bf16.vlgmr.msra.gmra.mrb[0].mxu1 %vm112_vm1, %v99_v11  ;;  %1138 = vmatpush1.bf16.msra.mxu0 %v3993_v12  ;;  %v4012_v25 = vld [vmem:[#allocation4 + $0x54] ss:$8 sps:$4 sm:$0xff]   ;;  %v4009_v26 = vld [vmem:[#allocation4 + $0x120] ss:$8 sps:$4 sm:$0xff]   ;;  %v4014_v27 = vld [vmem:[#allocation4 + $0x50] ss:$8 sps:$4 sm:$0xff]  }
  0x3e   :  { %171 = vmatpush1.bf16.msra.mxu1 %v124_v13  ;;  %1139 = vmatprep.subr.bf16.mxu0 %v3994_v14  ;;  %v4017_v28 = vld [vmem:[#allocation4 + $0x134] ss:$8 sps:$4 sm:$0xff]   ;;  %v4018_v29 = vld [vmem:[#allocation4 + $0x64] ss:$8 sps:$4 sm:$0xff]   ;;  %v4015_v30 = vld [vmem:[#allocation4 + $0x130] ss:$8 sps:$4 sm:$0xff]  }
  0x3f   :  { %202 = vmatprep.mubr.bf16.mxu1 %v4521_v0  ;;  %1176 = vmatprep.subr.bf16.mxu1 %v3999_v15  ;;  %v4020_v31 = vld [vmem:[#allocation4 + $0x60] ss:$8 sps:$4 sm:$0xff]   ;;  %v4023_v32 = vld [vmem:[#allocation4 + $0x144] ss:$8 sps:$4 sm:$0xff]   ;;  %v4024_v33 = vld [vmem:[#allocation4 + $0x74] ss:$8 sps:$4 sm:$0xff]  }
  0x40   :  { %v4021_v34 = vld [vmem:[#allocation4 + $0x140] ss:$8 sps:$4 sm:$0xff]   ;;  %v4026_v35 = vld [vmem:[#allocation4 + $0x70] ss:$8 sps:$4 sm:$0xff]   ;;  %v4029_v36 = vld [vmem:[#allocation4 + $0x154] ss:$8 sps:$4 sm:$0xff]  }
  0x41   :  { %1140 = vmatpush1.bf16.msra.mxu0 %v3996_v16  ;;  %v4030_v37 = vld [vmem:[#allocation4 + $0x84] ss:$8 sps:$4 sm:$0xff]   ;;  %v4027_v38 = vld [vmem:[#allocation4 + $0x150] ss:$8 sps:$4 sm:$0xff]   ;;  %v4032_v39 = vld [vmem:[#allocation4 + $0x80] ss:$8 sps:$4 sm:$0xff]  }
  0x42   :  { %1141 = vmatprep.subr.bf16.mxu0 %v4000_v17  ;;  %v4035_v40 = vld [vmem:[#allocation4 + $0x164] ss:$8 sps:$4 sm:$0xff]   ;;  %v4036_v41 = vld [vmem:[#allocation4 + $0x94] ss:$8 sps:$4 sm:$0xff]   ;;  %v4033_v42 = vld [vmem:[#allocation4 + $0x160] ss:$8 sps:$4 sm:$0xff]  }
  0x43   :  { %v4038_v43 = vld [vmem:[#allocation4 + $0x90] ss:$8 sps:$4 sm:$0xff]   ;;  %v4041_v44 = vld [vmem:[#allocation4 + $0x174] ss:$8 sps:$4 sm:$0xff]   ;;  %v4042_v45 = vld [vmem:[#allocation4 + $0xa4] ss:$8 sps:$4 sm:$0xff]  }
  0x44   :  { %v4039_v46 = vld [vmem:[#allocation4 + $0x170] ss:$8 sps:$4 sm:$0xff]   ;;  %v4044_v47 = vld [vmem:[#allocation4 + $0xa0] ss:$8 sps:$4 sm:$0xff]   ;;  %v4047_v48 = vld [vmem:[#allocation4 + $0x184] ss:$8 sps:$4 sm:$0xff]  }
  0x45   :  { %3513 = vmatmul.mubr.msk.bf16.vlgmr.msra.gmra.mrb[4].mxu1 %vm112_vm1, %v99_v11  ;;  %1142 = vmatpush1.bf16.msra.mxu0 %v4002_v19  ;;  %v4048_v49 = vld [vmem:[#allocation4 + $0xb4] ss:$8 sps:$4 sm:$0xff]   ;;  %v95_v50 = vld [vmem:[%s4867_s1] sm:$0xff]  ;;  %v4050_v53 = vld [vmem:[#allocation4 + $0xb0] ss:$8 sps:$4 sm:$0xff]   ;;  %vm2375_vm2 = vcmask 261120  }
  0x46   :  { %1177 = vmatpush1.bf16.msra.mxu1 %v3997_v18  ;;  %1143 = vmatprep.subr.bf16.mxu0 %v4006_v21  ;;  %v3515_v51 = vcombine.high %v95_v50, %v95_v50  ;;  %v4045_v52 = vld [vmem:[#allocation4 + $0x180] ss:$8 sps:$4 sm:$0xff]   ;;  %v4053_v54 = vld [vmem:[#allocation4 + $0x194] ss:$8 sps:$4 sm:$0xff]   ;;  %v4054_v55 = vld [vmem:[#allocation4 + $0xc4] ss:$8 sps:$4 sm:$0xff]   ;;  %v3514_v12 = vcombine.low %v95_v50, %v95_v50 }
  0x47   :  { %1178 = vmatprep.subr.bf16.mxu1 %v4005_v20  ;;  %v4051_v56 = vld [vmem:[#allocation4 + $0x190] ss:$8 sps:$4 sm:$0xff]   ;;  %v4056_v57 = vld [vmem:[#allocation4 + $0xc0] ss:$8 sps:$4 sm:$0xff]   ;;  %v4059_v59 = vld [vmem:[#allocation4 + $0x1a4] ss:$8 sps:$4 sm:$0xff]   ;;  %1208 = vmatprep.mubr.bf16.mxu1 %v3517_v61 }
  0x48   :  { %1167 = vmatprep.mubr.bf16.mxu0 %v3515_v51  ;;  %v4060_v60 = vld [vmem:[#allocation4 + $0xd4] ss:$8 sps:$4 sm:$0xff]   ;;  %v4057_v62 = vld [vmem:[#allocation4 + $0x1a0] ss:$8 sps:$4 sm:$0xff]   ;;  %v4062_v63 = vld [vmem:[#allocation4 + $0xd0] ss:$8 sps:$4 sm:$0xff]  }
  0x49   :  { %1144 = vmatpush1.bf16.msra.mxu0 %v4008_v23  ;;  %v4065_v1 = vld [vmem:[#allocation4 + $0x1b4] ss:$8 sps:$4 sm:$0xff]   ;;  %v4066_v2 = vld [vmem:[#allocation4 + $0xe4] ss:$8 sps:$4 sm:$0xff]   ;;  %v4063_v3 = vld [vmem:[#allocation4 + $0x1b0] ss:$8 sps:$4 sm:$0xff]  }
  0x4a   :  { %1179 = vmatpush1.bf16.msra.mxu1 %v4003_v22  ;;  %1145 = vmatprep.subr.bf16.mxu0 %v4012_v25  ;;  %v4068_v4 = vld [vmem:[#allocation4 + $0xe0] ss:$8 sps:$4 sm:$0xff]   ;;  %v4071_v5 = vld [vmem:[#allocation4 + $0x1c4] ss:$8 sps:$4 sm:$0xff]   ;;  %v4072_v6 = vld [vmem:[#allocation4 + $0xf4] ss:$8 sps:$4 sm:$0xff]  }
  0x4b   :  { %1180 = vmatprep.subr.bf16.mxu1 %v4011_v24  ;;  %v4069_v7 = vld [vmem:[#allocation4 + $0x1c0] ss:$8 sps:$4 sm:$0xff]   ;;  %v4074_v8 = vld [vmem:[#allocation4 + $0xf0] ss:$8 sps:$4 sm:$0xff]   ;;  %v4077_v9 = vld [vmem:[#allocation4 + $0x1d4] ss:$8 sps:$4 sm:$0xff]   ;;  %v3516_v24 = vcombine.low %v4671_v58, %v4671_v58 }
  0x4c   :  { %v4082_v10 = vld [vmem:[#allocation4 + $0x204] ss:$8 sps:$4 sm:$0xff]   ;;  %v4075_v11 = vld [vmem:[#allocation4 + $0x1d0] ss:$8 sps:$4 sm:$0xff]   ;;  %v4080_v13 = vld [vmem:[#allocation4 + $0x200] ss:$8 sps:$4 sm:$0xff]  }
  0x4d   :  { %1146 = vmatpush1.bf16.msra.mxu0 %v4014_v27  ;;  %v4085_v14 = vld [vmem:[#allocation4 + $0x1e4] ss:$8 sps:$4 sm:$0xff]   ;;  %v4088_v15 = vld [vmem:[#allocation4 + $0x214] ss:$8 sps:$4 sm:$0xff]   ;;  %v4083_v16 = vld [vmem:[#allocation4 + $0x1e0] ss:$8 sps:$4 sm:$0xff]  }
  0x4e   :  { %1181 = vmatpush1.bf16.msra.mxu1 %v4009_v26  ;;  %1147 = vmatprep.subr.bf16.mxu0 %v4018_v29  ;;  %v4086_v17 = vld [vmem:[#allocation4 + $0x210] ss:$8 sps:$4 sm:$0xff]   ;;  %v4091_v18 = vld [vmem:[#allocation4 + $0x1f4] ss:$8 sps:$4 sm:$0xff]   ;;  %v4094_v19 = vld [vmem:[#allocation4 + $0x224] ss:$8 sps:$4 sm:$0xff]  }
  0x4f   :  { %1182 = vmatprep.subr.bf16.mxu1 %v4017_v28  ;;  %v4089_v20 = vld [vmem:[#allocation4 + $0x1f0] ss:$8 sps:$4 sm:$0xff]   ;;  %v4092_v21 = vld [vmem:[#allocation4 + $0x220] ss:$8 sps:$4 sm:$0xff]   ;;  %v4099_v22 = vld [vmem:[#allocation4 + $0x304] ss:$8 sps:$4 sm:$0xff]  }
  0x50   :  { %v4102_v23 = vld [vmem:[#allocation4 + $0x234] ss:$8 sps:$4 sm:$0xff]   ;;  %v4097_v25 = vld [vmem:[#allocation4 + $0x300] ss:$8 sps:$4 sm:$0xff]   ;;  %v4100_v26 = vld [vmem:[#allocation4 + $0x230] ss:$8 sps:$4 sm:$0xff]  }
  0x51   :  { %1148 = vmatpush1.bf16.msra.mxu0 %v4020_v31  ;;  %v4105_v27 = vld [vmem:[#allocation4 + $0x314] ss:$8 sps:$4 sm:$0xff]   ;;  %v4108_v28 = vld [vmem:[#allocation4 + $0x244] ss:$8 sps:$4 sm:$0xff]   ;;  %v4103_v29 = vld [vmem:[#allocation4 + $0x310] ss:$8 sps:$4 sm:$0xff]  }
  0x52   :  { %1183 = vmatpush1.bf16.msra.mxu1 %v4015_v30  ;;  %1149 = vmatprep.subr.bf16.mxu0 %v4024_v33  ;;  %v4106_v30 = vld [vmem:[#allocation4 + $0x240] ss:$8 sps:$4 sm:$0xff]   ;;  %v4111_v31 = vld [vmem:[#allocation4 + $0x324] ss:$8 sps:$4 sm:$0xff]   ;;  %v4680_v33 = vld [vmem:[%s4867_s1 + $0x10] sm:$0xff]  ;;  %vm2345_vm3 = vcmask 523264  }
  0x53   :  { %1184 = vmatprep.subr.bf16.mxu1 %v4023_v32  ;;  %v4114_v32 = vld [vmem:[#allocation4 + $0x254] ss:$8 sps:$4 sm:$0xff]   ;;  %v4130_v50 = vld [vmem:[#allocation4 + $0x280] ss:$8 sps:$4 sm:$0xff]   ;;  %v4135_v51 = vld [vmem:[#allocation4 + $0x364] ss:$8 sps:$4 sm:$0xff]  }
  0x54   :  { %v4142_v58 = vld [vmem:[#allocation4 + $0x2a0] ss:$8 sps:$4 sm:$0xff]   ;;  %vm2347_vm4 = vcmask 785408  }
  0x55   :  { %1150 = vmatpush1.bf16.msra.mxu0 %v4026_v35  ;;  %v4112_v35 = vld [vmem:[#allocation4 + $0x250] ss:$8 sps:$4 sm:$0xff]   ;;  %v4145_v61 = vld [vmem:[#allocation4 + $0x380] ss:$8 sps:$4 sm:$0xff]  }
  0x56   :  { %1185 = vmatpush1.bf16.msra.mxu1 %v4021_v34  ;;  %1151 = vmatprep.subr.bf16.mxu0 %v4030_v37  ;;  %v4109_v34 = vld [vmem:[#allocation4 + $0x320] ss:$8 sps:$4 sm:$0xff]   ;;  %v4117_v37 = vld [vmem:[#allocation4 + $0x334] ss:$8 sps:$4 sm:$0xff]  }
  0x57   :  { %1186 = vmatprep.subr.bf16.mxu1 %v4029_v36  ;;  %v3519_v36 = vcombine.high %v4680_v33, %v4680_v33 }
  0x59   :  { %1152 = vmatpush1.bf16.msra.mxu0 %v4032_v39  ;;  %v4115_v39 = vld [vmem:[#allocation4 + $0x330] ss:$8 sps:$4 sm:$0xff]  }
  0x5a   :  { %1187 = vmatpush1.bf16.msra.mxu1 %v4027_v38  ;;  %1153 = vmatprep.subr.bf16.mxu0 %v4036_v41  ;;  %v4120_v38 = vld [vmem:[#allocation4 + $0x264] ss:$8 sps:$4 sm:$0xff]  }
  0x5b   :  { %1188 = vmatprep.subr.bf16.mxu1 %v4035_v40  ;;  %v4118_v40 = vld [vmem:[#allocation4 + $0x260] ss:$8 sps:$4 sm:$0xff]   ;;  %v4123_v41 = vld [vmem:[#allocation4 + $0x344] ss:$8 sps:$4 sm:$0xff]  }
  0x5d   :  { %1154 = vmatpush1.bf16.msra.mxu0 %v4038_v43  ;;  %v4121_v43 = vld [vmem:[#allocation4 + $0x340] ss:$8 sps:$4 sm:$0xff]  }
  0x5e   :  { %1189 = vmatpush1.bf16.msra.mxu1 %v4033_v42  ;;  %1155 = vmatprep.subr.bf16.mxu0 %v4042_v45  ;;  %v4126_v42 = vld [vmem:[#allocation4 + $0x274] ss:$8 sps:$4 sm:$0xff]   ;;  %v4124_v45 = vld [vmem:[#allocation4 + $0x270] ss:$8 sps:$4 sm:$0xff]  }
  0x5f   :  { %1190 = vmatprep.subr.bf16.mxu1 %v4041_v44  ;;  %v4687_v44 = vld [vmem:[%s4867_s1 + $0x18] sm:$0xff] }
  0x61   :  { %1156 = vmatpush1.bf16.msra.mxu0 %v4044_v47  ;;  %v3521_v47 = vcombine.high %v4687_v44, %v4687_v44 }
  0x62   :  { %1191 = vmatpush1.bf16.msra.mxu1 %v4039_v46  ;;  %1157 = vmatprep.subr.bf16.mxu0 %v4048_v49  ;;  %v4129_v46 = vld [vmem:[#allocation4 + $0x354] ss:$8 sps:$4 sm:$0xff]   ;;  %v4127_v49 = vld [vmem:[#allocation4 + $0x350] ss:$8 sps:$4 sm:$0xff]  }
  0x63   :  { %1192 = vmatprep.subr.bf16.mxu1 %v4047_v48  ;;  %v4132_v48 = vld [vmem:[#allocation4 + $0x284] ss:$8 sps:$4 sm:$0xff]  }
  0x65   :  { %1158 = vmatpush1.bf16.msra.mxu0 %v4050_v53  ;;  %v4133_v53 = vld [vmem:[#allocation4 + $0x360] ss:$8 sps:$4 sm:$0xff]  }
  0x66   :  { %1193 = vmatpush1.bf16.msra.mxu1 %v4045_v52  ;;  %1159 = vmatprep.subr.bf16.mxu0 %v4054_v55  ;;  %v4138_v52 = vld [vmem:[#allocation4 + $0x294] ss:$8 sps:$4 sm:$0xff]  }
  0x67   :  { %1194 = vmatprep.subr.bf16.mxu1 %v4053_v54  ;;  %v4136_v54 = vld [vmem:[#allocation4 + $0x290] ss:$8 sps:$4 sm:$0xff]   ;;  %v4141_v55 = vld [vmem:[#allocation4 + $0x374] ss:$8 sps:$4 sm:$0xff]  }
  0x69   :  { %1160 = vmatpush1.bf16.msra.mxu0 %v4056_v57  ;;  %v4139_v57 = vld [vmem:[#allocation4 + $0x370] ss:$8 sps:$4 sm:$0xff]  }
  0x6a   :  { %1195 = vmatpush1.bf16.msra.mxu1 %v4051_v56  ;;  %1161 = vmatprep.subr.bf16.mxu0 %v4060_v60  ;;  %v4144_v56 = vld [vmem:[#allocation4 + $0x2a4] ss:$8 sps:$4 sm:$0xff]   ;;  %v4150_v60 = vld [vmem:[#allocation4 + $0x2b4] ss:$8 sps:$4 sm:$0xff]  }
  0x6b   :  { %1196 = vmatprep.subr.bf16.mxu1 %v4059_v59  ;;  %v4147_v59 = vld [vmem:[#allocation4 + $0x384] ss:$8 sps:$4 sm:$0xff]  }
  0x6d   :  { %1162 = vmatpush1.bf16.msra.mxu0 %v4062_v63  ;;  %v4153_v63 = vld [vmem:[#allocation4 + $0x394] ss:$8 sps:$4 sm:$0xff]  }
  0x6e   :  { %1197 = vmatpush1.bf16.msra.mxu1 %v4057_v62  ;;  %1163 = vmatprep.subr.bf16.mxu0 %v4066_v2  ;;  %v4148_v62 = vld [vmem:[#allocation4 + $0x2b0] ss:$8 sps:$4 sm:$0xff]  }
  0x6f   :  { %1198 = vmatprep.subr.bf16.mxu1 %v4065_v1  ;;  %v4156_v1 = vld [vmem:[#allocation4 + $0x2c4] ss:$8 sps:$4 sm:$0xff]   ;;  %v4151_v2 = vld [vmem:[#allocation4 + $0x390] ss:$8 sps:$4 sm:$0xff]  }
  0x71   :  { %1164 = vmatpush1.bf16.msra.mxu0 %v4068_v4  ;;  %v4159_v4 = vld [vmem:[#allocation4 + $0x3a4] ss:$8 sps:$4 sm:$0xff]  }
  0x72   :  { %1199 = vmatpush1.bf16.msra.mxu1 %v4063_v3  ;;  %1165 = vmatprep.subr.bf16.mxu0 %v4072_v6  ;;  %v4154_v3 = vld [vmem:[#allocation4 + $0x2c0] ss:$8 sps:$4 sm:$0xff]  }
  0x73   :  { %1200 = vmatprep.subr.bf16.mxu1 %v4071_v5  ;;  %v4162_v5 = vld [vmem:[#allocation4 + $0x2d4] ss:$8 sps:$4 sm:$0xff]   ;;  %v4157_v6 = vld [vmem:[#allocation4 + $0x3a0] ss:$8 sps:$4 sm:$0xff]  }
  0x75   :  { %1166 = vmatpush1.bf16.msra.mxu0 %v4074_v8  ;;  %v4165_v8 = vld [vmem:[#allocation4 + $0x3b4] ss:$8 sps:$4 sm:$0xff]  }
  0x76   :  { %1201 = vmatpush1.bf16.msra.mxu1 %v4069_v7  ;;  %1217 = vmatprep.subr.bf16.mxu0 %v4082_v10  ;;  %v4160_v7 = vld [vmem:[#allocation4 + $0x2d0] ss:$8 sps:$4 sm:$0xff]  }
  0x77   :  { %1202 = vmatprep.subr.bf16.mxu1 %v4077_v9  ;;  %v4168_v9 = vld [vmem:[#allocation4 + $0x2e4] ss:$8 sps:$4 sm:$0xff]   ;;  %v4163_v10 = vld [vmem:[#allocation4 + $0x3b0] ss:$8 sps:$4 sm:$0xff]  }
  0x78   :  { %1168 = vmatmul.mubr.bf16.vlgmr.msra.gmra.mrb[0].mxu0 %v3514_v12  ;;  %v4171_v12 = vld [vmem:[#allocation4 + $0x3c4] ss:$8 sps:$4 sm:$0xff]  }
  0x79   :  { %1218 = vmatpush1.bf16.msra.mxu0 %v4080_v13  ;;  %1249 = vmatprep.mubr.bf16.mxu0 %v3519_v36  ;;  %v4174_v13 = vld [vmem:[#allocation4 + $0x2f4] ss:$8 sps:$4 sm:$0xff]   ;;  %v4200_v36 = vld [vmem:[#allocation2 + $0x30] ss:$8 sps:$4 sm:$0xff]  }
  0x7a   :  { %1203 = vmatpush1.bf16.msra.mxu1 %v4075_v11  ;;  %1219 = vmatprep.subr.bf16.mxu0 %v4088_v15  ;;  %v4166_v11 = vld [vmem:[#allocation4 + $0x2e0] ss:$8 sps:$4 sm:$0xff]   ;;  %v4172_v15 = vld [vmem:[#allocation4 + $0x2f0] ss:$8 sps:$4 sm:$0xff]  }
  0x7b   :  { %1204 = vmatprep.subr.bf16.mxu1 %v4085_v14  ;;  %v4169_v14 = vld [vmem:[#allocation4 + $0x3c0] ss:$8 sps:$4 sm:$0xff]  }
  0x7d   :  { %1220 = vmatpush1.bf16.msra.mxu0 %v4086_v17  ;;  %v4182_v17 = vld [vmem:[#allocation2 + $0x4] ss:$8 sps:$4 sm:$0xff]  }
  0x7e   :  { %1205 = vmatpush1.bf16.msra.mxu1 %v4083_v16  ;;  %1221 = vmatprep.subr.bf16.mxu0 %v4094_v19  ;;  %v4179_v16 = vld [vmem:[#allocation4 + $0x3d4] ss:$8 sps:$4 sm:$0xff]   ;;  %v3518_v19 = vcombine.low %v4680_v33, %v4680_v33  ;;  %v4197_v33 = vld [vmem:[#allocation2 + $0x100] ss:$8 sps:$4 sm:$0xff]  }
  0x7f   :  { %1206 = vmatprep.subr.bf16.mxu1 %v4091_v18  ;;  %v4177_v18 = vld [vmem:[#allocation4 + $0x3d0] ss:$8 sps:$4 sm:$0xff]  }
  0x81   :  { %1222 = vmatpush1.bf16.msra.mxu0 %v4092_v21  ;;  %v4696_v21 = vld [vmem:[%s4866_s0] sm:$0xff] }
  0x82   :  { %1207 = vmatpush1.bf16.msra.mxu1 %v4089_v20  ;;  %1223 = vmatprep.subr.bf16.mxu0 %v4102_v23  ;;  %v4180_v20 = vld [vmem:[#allocation2] ss:$8 sps:$4 sm:$0xff]   ;;  %v4188_v23 = vld [vmem:[#allocation2 + $0x14] ss:$8 sps:$4 sm:$0xff]  }
  0x83   :  { %1258 = vmatprep.subr.bf16.mxu1 %v4099_v22  ;;  %v4185_v22 = vld [vmem:[#allocation4 + $0x3e4] ss:$8 sps:$4 sm:$0xff]  }
  0x85   :  { %1209 = vmatmul.mubr.bf16.vlgmr.msra.gmra.mrb[8].mxu1 %v3516_v24  ;;  %1224 = vmatpush1.bf16.msra.mxu0 %v4100_v26  ;;  %v3651_v24 = vcombine.high %v4696_v21, %v4696_v21  ;;  %v4186_v26 = vld [vmem:[#allocation2 + $0x10] ss:$8 sps:$4 sm:$0xff]  }
  0x86   :  { %1259 = vmatpush1.bf16.msra.mxu1 %v4097_v25  ;;  %1225 = vmatprep.subr.bf16.mxu0 %v4108_v28  ;;  %v4183_v25 = vld [vmem:[#allocation4 + $0x3e0] ss:$8 sps:$4 sm:$0xff]   ;;  %v4194_v28 = vld [vmem:[#allocation2 + $0x24] ss:$8 sps:$4 sm:$0xff]  }
  0x87   :  { %1260 = vmatprep.subr.bf16.mxu1 %v4105_v27  ;;  %1290 = vmatprep.mubr.bf16.mxu1 %v3521_v47  ;;  %v4191_v27 = vld [vmem:[#allocation4 + $0x3f4] ss:$8 sps:$4 sm:$0xff]   ;;  %v4220_v47 = vld [vmem:[#allocation2 + $0x64] ss:$8 sps:$4 sm:$0xff]  }
  0x89   :  { %1226 = vmatpush1.bf16.msra.mxu0 %v4106_v30  ;;  %v4192_v30 = vld [vmem:[#allocation2 + $0x20] ss:$8 sps:$4 sm:$0xff]  }
  0x8a   :  { %1261 = vmatpush1.bf16.msra.mxu1 %v4103_v29  ;;  %1227 = vmatprep.subr.bf16.mxu0 %v4114_v32  ;;  %v4189_v29 = vld [vmem:[#allocation4 + $0x3f0] ss:$8 sps:$4 sm:$0xff]   ;;  %v4202_v32 = vld [vmem:[#allocation2 + $0x34] ss:$8 sps:$4 sm:$0xff]  }
  0x8b   :  { %1262 = vmatprep.subr.bf16.mxu1 %v4111_v31  ;;  %v4199_v31 = vld [vmem:[#allocation2 + $0x104] ss:$8 sps:$4 sm:$0xff]  }
  0x8d   :  { %1228 = vmatpush1.bf16.msra.mxu0 %v4112_v35  ;;  %v4705_v35 = vld [vmem:[%s4866_s0 + $0x8] sm:$0xff] }
  0x8e   :  { %1263 = vmatpush1.bf16.msra.mxu1 %v4109_v34  ;;  %1229 = vmatprep.subr.bf16.mxu0 %v4120_v38  ;;  %v3520_v34 = vcombine.low %v4687_v44, %v4687_v44  ;;  %v4208_v38 = vld [vmem:[#allocation2 + $0x44] ss:$8 sps:$4 sm:$0xff]   ;;  %v4209_v44 = vld [vmem:[#allocation2 + $0x120] ss:$8 sps:$4 sm:$0xff]  }
  0x8f   :  { %1264 = vmatprep.subr.bf16.mxu1 %v4117_v37  ;;  %v4205_v37 = vld [vmem:[#allocation2 + $0x114] ss:$8 sps:$4 sm:$0xff]  }
  0x91   :  { %1230 = vmatpush1.bf16.msra.mxu0 %v4118_v40  ;;  %v4203_v40 = vld [vmem:[#allocation2 + $0x110] ss:$8 sps:$4 sm:$0xff]  }
  0x92   :  { %1265 = vmatpush1.bf16.msra.mxu1 %v4115_v39  ;;  %1231 = vmatprep.subr.bf16.mxu0 %v4126_v42  ;;  %v3653_v39 = vcombine.high %v4705_v35, %v4705_v35  ;;  %v4211_v42 = vld [vmem:[#allocation2 + $0x124] ss:$8 sps:$4 sm:$0xff]  }
  0x93   :  { %1266 = vmatprep.subr.bf16.mxu1 %v4123_v41  ;;  %v4206_v41 = vld [vmem:[#allocation2 + $0x40] ss:$8 sps:$4 sm:$0xff]  }
  0x95   :  { %1232 = vmatpush1.bf16.msra.mxu0 %v4124_v45  ;;  %v4212_v45 = vld [vmem:[#allocation2 + $0x50] ss:$8 sps:$4 sm:$0xff]  }
  0x96   :  { %1267 = vmatpush1.bf16.msra.mxu1 %v4121_v43  ;;  %1233 = vmatprep.subr.bf16.mxu0 %v4132_v48  ;;  %v4214_v43 = vld [vmem:[#allocation2 + $0x54] ss:$8 sps:$4 sm:$0xff]   ;;  %v4215_v48 = vld [vmem:[#allocation2 + $0x130] ss:$8 sps:$4 sm:$0xff]  }
  0x97   :  { %1268 = vmatprep.subr.bf16.mxu1 %v4129_v46  ;;  %v4217_v46 = vld [vmem:[#allocation2 + $0x134] ss:$8 sps:$4 sm:$0xff]  }
  0x99   :  { %1234 = vmatpush1.bf16.msra.mxu0 %v4130_v50  ;;  %v4223_v50 = vld [vmem:[#allocation2 + $0x144] ss:$8 sps:$4 sm:$0xff]  }
  0x9a   :  { %1269 = vmatpush1.bf16.msra.mxu1 %v4127_v49  ;;  %1235 = vmatprep.subr.bf16.mxu0 %v4138_v52  ;;  %v4218_v49 = vld [vmem:[#allocation2 + $0x60] ss:$8 sps:$4 sm:$0xff]  }
  0x9b   :  { %1270 = vmatprep.subr.bf16.mxu1 %v4135_v51  ;;  %v4226_v51 = vld [vmem:[#allocation2 + $0x74] ss:$8 sps:$4 sm:$0xff]   ;;  %v4221_v52 = vld [vmem:[#allocation2 + $0x140] ss:$8 sps:$4 sm:$0xff]  }
  0x9d   :  { %1236 = vmatpush1.bf16.msra.mxu0 %v4136_v54  ;;  %v4229_v54 = vld [vmem:[#allocation2 + $0x154] ss:$8 sps:$4 sm:$0xff]  }
  0x9e   :  { %1271 = vmatpush1.bf16.msra.mxu1 %v4133_v53  ;;  %1237 = vmatprep.subr.bf16.mxu0 %v4144_v56  ;;  %v4224_v53 = vld [vmem:[#allocation2 + $0x70] ss:$8 sps:$4 sm:$0xff]  }
  0x9f   :  { %1272 = vmatprep.subr.bf16.mxu1 %v4141_v55  ;;  %v4232_v55 = vld [vmem:[#allocation2 + $0x84] ss:$8 sps:$4 sm:$0xff]   ;;  %v4227_v56 = vld [vmem:[#allocation2 + $0x150] ss:$8 sps:$4 sm:$0xff]  }
  0xa1   :  { %1238 = vmatpush1.bf16.msra.mxu0 %v4142_v58  ;;  %v4235_v58 = vld [vmem:[#allocation2 + $0x164] ss:$8 sps:$4 sm:$0xff]  }
  0xa2   :  { %1273 = vmatpush1.bf16.msra.mxu1 %v4139_v57  ;;  %1239 = vmatprep.subr.bf16.mxu0 %v4150_v60  ;;  %v4230_v57 = vld [vmem:[#allocation2 + $0x80] ss:$8 sps:$4 sm:$0xff]  }
  0xa3   :  { %1274 = vmatprep.subr.bf16.mxu1 %v4147_v59  ;;  %v4238_v59 = vld [vmem:[#allocation2 + $0x94] ss:$8 sps:$4 sm:$0xff]   ;;  %v4233_v60 = vld [vmem:[#allocation2 + $0x160] ss:$8 sps:$4 sm:$0xff]  }
  0xa5   :  { %1240 = vmatpush1.bf16.msra.mxu0 %v4148_v62  ;;  %v4241_v62 = vld [vmem:[#allocation2 + $0x174] ss:$8 sps:$4 sm:$0xff]  }
  0xa6   :  { %1275 = vmatpush1.bf16.msra.mxu1 %v4145_v61  ;;  %1241 = vmatprep.subr.bf16.mxu0 %v4156_v1  ;;  %v4236_v61 = vld [vmem:[#allocation2 + $0x90] ss:$8 sps:$4 sm:$0xff]  }
  0xa7   :  { %1276 = vmatprep.subr.bf16.mxu1 %v4153_v63  ;;  %v4244_v63 = vld [vmem:[#allocation2 + $0xa4] ss:$8 sps:$4 sm:$0xff]   ;;  %v4239_v1 = vld [vmem:[#allocation2 + $0x170] ss:$8 sps:$4 sm:$0xff]  }
  0xa9   :  { %1242 = vmatpush1.bf16.msra.mxu0 %v4154_v3  ;;  %v4247_v3 = vld [vmem:[#allocation2 + $0x184] ss:$8 sps:$4 sm:$0xff]  }
  0xaa   :  { %1277 = vmatpush1.bf16.msra.mxu1 %v4151_v2  ;;  %1243 = vmatprep.subr.bf16.mxu0 %v4162_v5  ;;  %v4242_v2 = vld [vmem:[#allocation2 + $0xa0] ss:$8 sps:$4 sm:$0xff]  }
  0xab   :  { %1278 = vmatprep.subr.bf16.mxu1 %v4159_v4  ;;  %v4250_v4 = vld [vmem:[#allocation2 + $0xb4] ss:$8 sps:$4 sm:$0xff]   ;;  %v4245_v5 = vld [vmem:[#allocation2 + $0x180] ss:$8 sps:$4 sm:$0xff]  }
  0xad   :  { %1244 = vmatpush1.bf16.msra.mxu0 %v4160_v7  ;;  %v4253_v7 = vld [vmem:[#allocation2 + $0x194] ss:$8 sps:$4 sm:$0xff]  }
  0xae   :  { %1279 = vmatpush1.bf16.msra.mxu1 %v4157_v6  ;;  %1245 = vmatprep.subr.bf16.mxu0 %v4168_v9  ;;  %v4248_v6 = vld [vmem:[#allocation2 + $0xb0] ss:$8 sps:$4 sm:$0xff]  }
  0xaf   :  { %1280 = vmatprep.subr.bf16.mxu1 %v4165_v8  ;;  %v4256_v8 = vld [vmem:[#allocation2 + $0xc4] ss:$8 sps:$4 sm:$0xff]   ;;  %v4251_v9 = vld [vmem:[#allocation2 + $0x190] ss:$8 sps:$4 sm:$0xff]  }
  0xb1   :  { %1246 = vmatpush1.bf16.msra.mxu0 %v4166_v11  ;;  %v4259_v11 = vld [vmem:[#allocation2 + $0x1a4] ss:$8 sps:$4 sm:$0xff]  }
  0xb2   :  { %1281 = vmatpush1.bf16.msra.mxu1 %v4163_v10  ;;  %1247 = vmatprep.subr.bf16.mxu0 %v4174_v13  ;;  %v4254_v10 = vld [vmem:[#allocation2 + $0xc0] ss:$8 sps:$4 sm:$0xff]  }
  0xb3   :  { %1282 = vmatprep.subr.bf16.mxu1 %v4171_v12  ;;  %v4262_v12 = vld [vmem:[#allocation2 + $0xd4] ss:$8 sps:$4 sm:$0xff]   ;;  %v4257_v13 = vld [vmem:[#allocation2 + $0x1a0] ss:$8 sps:$4 sm:$0xff]  }
  0xb5   :  { %1248 = vmatpush1.bf16.msra.mxu0 %v4172_v15  ;;  %v4265_v15 = vld [vmem:[#allocation2 + $0x1b4] ss:$8 sps:$4 sm:$0xff]  }
  0xb6   :  { %1283 = vmatpush1.bf16.msra.mxu1 %v4169_v14  ;;  %1967 = vmatprep.subr.bf16.mxu0 %v4182_v17  ;;  %v4260_v14 = vld [vmem:[#allocation2 + $0xd0] ss:$8 sps:$4 sm:$0xff]  }
  0xb7   :  { %1284 = vmatprep.subr.bf16.mxu1 %v4179_v16  ;;  %v4268_v16 = vld [vmem:[#allocation2 + $0xe4] ss:$8 sps:$4 sm:$0xff]   ;;  %v4263_v17 = vld [vmem:[#allocation2 + $0x1b0] ss:$8 sps:$4 sm:$0xff]  }
  0xb8   :  { %1250 = vmatmul.mubr.bf16.vlgmr.msra.gmra.mrb[4].mxu0 %v3518_v19  ;;  %v4271_v19 = vld [vmem:[#allocation2 + $0x1c4] ss:$8 sps:$4 sm:$0xff]  }
  0xb9   :  { %1968 = vmatpush1.bf16.msra.mxu0 %v4180_v20  ;;  %1999 = vmatprep.mubr.bf16.mxu0 %v3651_v24  ;;  %v4274_v20 = vld [vmem:[#allocation2 + $0xf4] ss:$8 sps:$4 sm:$0xff]  }
  0xba   :  { %1285 = vmatpush1.bf16.msra.mxu1 %v4177_v18  ;;  %1969 = vmatprep.subr.bf16.mxu0 %v4188_v23  ;;  %v4266_v18 = vld [vmem:[#allocation2 + $0xe0] ss:$8 sps:$4 sm:$0xff]   ;;  %v4272_v23 = vld [vmem:[#allocation2 + $0xf0] ss:$8 sps:$4 sm:$0xff]   ;;  %v4279_v24 = vld [vmem:[#allocation2 + $0x1d4] ss:$8 sps:$4 sm:$0xff]  }
  0xbb   :  { %1286 = vmatprep.subr.bf16.mxu1 %v4185_v22  ;;  %v4269_v22 = vld [vmem:[#allocation2 + $0x1c0] ss:$8 sps:$4 sm:$0xff]  }
  0xbd   :  { %1970 = vmatpush1.bf16.msra.mxu0 %v4186_v26  ;;  %v3650_v26 = vcombine.low %v4696_v21, %v4696_v21  ;;  %v4283_v21 = vld [vmem:[#allocation2 + $0x1e0] ss:$8 sps:$4 sm:$0xff]  }
  0xbe   :  { %1287 = vmatpush1.bf16.msra.mxu1 %v4183_v25  ;;  %1971 = vmatprep.subr.bf16.mxu0 %v4194_v28  ;;  %v4282_v25 = vld [vmem:[#allocation2 + $0x204] ss:$8 sps:$4 sm:$0xff]   ;;  %v4277_v28 = vld [vmem:[#allocation2 + $0x1d0] ss:$8 sps:$4 sm:$0xff]  }
  0xbf   :  { %1288 = vmatprep.subr.bf16.mxu1 %v4191_v27  ;;  %v4714_v27 = vld [vmem:[%s4866_s0 + $0x10] sm:$0xff] }
  0xc1   :  { %1972 = vmatpush1.bf16.msra.mxu0 %v4192_v30  ;;  %v4285_v30 = vld [vmem:[#allocation2 + $0x1e4] ss:$8 sps:$4 sm:$0xff]  }
  0xc2   :  { %1289 = vmatpush1.bf16.msra.mxu1 %v4189_v29  ;;  %1973 = vmatprep.subr.bf16.mxu0 %v4202_v32  ;;  %v4280_v29 = vld [vmem:[#allocation2 + $0x200] ss:$8 sps:$4 sm:$0xff]   ;;  %v3655_v32 = vcombine.high %v4714_v27, %v4714_v27 }
  0xc3   :  { %2008 = vmatprep.subr.bf16.mxu1 %v4199_v31  ;;  %v4288_v31 = vld [vmem:[#allocation2 + $0x214] ss:$8 sps:$4 sm:$0xff]  }
  0xc5   :  { %1291 = vmatmul.mubr.bf16.vlgmr.msra.gmra.mrb[12].mxu1 %v3520_v34  ;;  %1974 = vmatpush1.bf16.msra.mxu0 %v4200_v36  ;;  %v4291_v34 = vld [vmem:[#allocation2 + $0x1f4] ss:$8 sps:$4 sm:$0xff]   ;;  %v4294_v36 = vld [vmem:[#allocation2 + $0x224] ss:$8 sps:$4 sm:$0xff]  }
  0xc6   :  { %2009 = vmatpush1.bf16.msra.mxu1 %v4197_v33  ;;  %1975 = vmatprep.subr.bf16.mxu0 %v4208_v38  ;;  %v4286_v33 = vld [vmem:[#allocation2 + $0x210] ss:$8 sps:$4 sm:$0xff]   ;;  %v4292_v38 = vld [vmem:[#allocation2 + $0x220] ss:$8 sps:$4 sm:$0xff]  }
  0xc7   :  { %2010 = vmatprep.subr.bf16.mxu1 %v4205_v37  ;;  %2040 = vmatprep.mubr.bf16.mxu1 %v3653_v39  ;;  %v4289_v37 = vld [vmem:[#allocation2 + $0x1f0] ss:$8 sps:$4 sm:$0xff]   ;;  %v4299_v39 = vld [vmem:[#allocation2 + $0x304] ss:$8 sps:$4 sm:$0xff]  }
  0xc9   :  { %1976 = vmatpush1.bf16.msra.mxu0 %v4206_v41  ;;  %v3652_v41 = vcombine.low %v4705_v35, %v4705_v35  ;;  %v4303_v35 = vld [vmem:[#allocation2 + $0x310] ss:$8 sps:$4 sm:$0xff]  }
  0xca   :  { %2011 = vmatpush1.bf16.msra.mxu1 %v4203_v40  ;;  %1977 = vmatprep.subr.bf16.mxu0 %v4214_v43  ;;  %v4302_v40 = vld [vmem:[#allocation2 + $0x234] ss:$8 sps:$4 sm:$0xff]   ;;  %v4297_v43 = vld [vmem:[#allocation2 + $0x300] ss:$8 sps:$4 sm:$0xff]  }
  0xcb   :  { %2012 = vmatprep.subr.bf16.mxu1 %v4211_v42  ;;  %v4723_v42 = vld [vmem:[%s4866_s0 + $0x18] sm:$0xff] }
  0xcd   :  { %1978 = vmatpush1.bf16.msra.mxu0 %v4212_v45  ;;  %v4305_v45 = vld [vmem:[#allocation2 + $0x314] ss:$8 sps:$4 sm:$0xff]  }
  0xce   :  { %2013 = vmatpush1.bf16.msra.mxu1 %v4209_v44  ;;  %1979 = vmatprep.subr.bf16.mxu0 %v4220_v47  ;;  %v4300_v44 = vld [vmem:[#allocation2 + $0x230] ss:$8 sps:$4 sm:$0xff]   ;;  %v3657_v47 = vcombine.high %v4723_v42, %v4723_v42 }
  0xcf   :  { %2014 = vmatprep.subr.bf16.mxu1 %v4217_v46  ;;  %v4308_v46 = vld [vmem:[#allocation2 + $0x244] ss:$8 sps:$4 sm:$0xff]  }
  0xd1   :  { %1980 = vmatpush1.bf16.msra.mxu0 %v4218_v49  ;;  %v4311_v49 = vld [vmem:[#allocation2 + $0x324] ss:$8 sps:$4 sm:$0xff]  }
  0xd2   :  { %2015 = vmatpush1.bf16.msra.mxu1 %v4215_v48  ;;  %1981 = vmatprep.subr.bf16.mxu0 %v4226_v51  ;;  %v4306_v48 = vld [vmem:[#allocation2 + $0x240] ss:$8 sps:$4 sm:$0xff]  }
  0xd3   :  { %2016 = vmatprep.subr.bf16.mxu1 %v4223_v50  ;;  %v4314_v50 = vld [vmem:[#allocation2 + $0x254] ss:$8 sps:$4 sm:$0xff]   ;;  %v4309_v51 = vld [vmem:[#allocation2 + $0x320] ss:$8 sps:$4 sm:$0xff]  }
  0xd5   :  { %1982 = vmatpush1.bf16.msra.mxu0 %v4224_v53  ;;  %v4317_v53 = vld [vmem:[#allocation2 + $0x334] ss:$8 sps:$4 sm:$0xff]  }
  0xd6   :  { %2017 = vmatpush1.bf16.msra.mxu1 %v4221_v52  ;;  %1983 = vmatprep.subr.bf16.mxu0 %v4232_v55  ;;  %v4312_v52 = vld [vmem:[#allocation2 + $0x250] ss:$8 sps:$4 sm:$0xff]  }
  0xd7   :  { %2018 = vmatprep.subr.bf16.mxu1 %v4229_v54  ;;  %v4320_v54 = vld [vmem:[#allocation2 + $0x264] ss:$8 sps:$4 sm:$0xff]   ;;  %v4315_v55 = vld [vmem:[#allocation2 + $0x330] ss:$8 sps:$4 sm:$0xff]  }
  0xd9   :  { %1984 = vmatpush1.bf16.msra.mxu0 %v4230_v57  ;;  %v4323_v57 = vld [vmem:[#allocation2 + $0x344] ss:$8 sps:$4 sm:$0xff]  }
  0xda   :  { %2019 = vmatpush1.bf16.msra.mxu1 %v4227_v56  ;;  %1985 = vmatprep.subr.bf16.mxu0 %v4238_v59  ;;  %v4318_v56 = vld [vmem:[#allocation2 + $0x260] ss:$8 sps:$4 sm:$0xff]  }
  0xdb   :  { %2020 = vmatprep.subr.bf16.mxu1 %v4235_v58  ;;  %v4326_v58 = vld [vmem:[#allocation2 + $0x274] ss:$8 sps:$4 sm:$0xff]  }
  0xdd   :  { %1986 = vmatpush1.bf16.msra.mxu0 %v4236_v61 }
  0xde   :  { %2021 = vmatpush1.bf16.msra.mxu1 %v4233_v60  ;;  %1987 = vmatprep.subr.bf16.mxu0 %v4244_v63  ;;  %v4324_v63 = vld [vmem:[#allocation2 + $0x270] ss:$8 sps:$4 sm:$0xff]  }
  0xdf   :  { %2022 = vmatprep.subr.bf16.mxu1 %v4241_v62  ;;  %v4321_v62 = vld [vmem:[#allocation2 + $0x340] ss:$8 sps:$4 sm:$0xff]  }
  0xe1   :  { %1988 = vmatpush1.bf16.msra.mxu0 %v4242_v2  ;;  %v4329_v2 = vld [vmem:[#allocation2 + $0x354] ss:$8 sps:$4 sm:$0xff]  }
  0xe2   :  { %2023 = vmatpush1.bf16.msra.mxu1 %v4239_v1  ;;  %1989 = vmatprep.subr.bf16.mxu0 %v4250_v4  ;;  %v4327_v4 = vld [vmem:[#allocation2 + $0x350] ss:$8 sps:$4 sm:$0xff]  }
  0xe3   :  { %2024 = vmatprep.subr.bf16.mxu1 %v4247_v3  ;;  %v4332_v3 = vld [vmem:[#allocation2 + $0x284] ss:$8 sps:$4 sm:$0xff]  }
  0xe5   :  { %1990 = vmatpush1.bf16.msra.mxu0 %v4248_v6  ;;  %v4335_v6 = vld [vmem:[#allocation2 + $0x364] ss:$8 sps:$4 sm:$0xff]  }
  0xe6   :  { %2025 = vmatpush1.bf16.msra.mxu1 %v4245_v5  ;;  %1991 = vmatprep.subr.bf16.mxu0 %v4256_v8  ;;  %v4330_v5 = vld [vmem:[#allocation2 + $0x280] ss:$8 sps:$4 sm:$0xff]  }
  0xe7   :  { %2026 = vmatprep.subr.bf16.mxu1 %v4253_v7  ;;  %v4338_v7 = vld [vmem:[#allocation2 + $0x294] ss:$8 sps:$4 sm:$0xff]  }
  0xe9   :  { %1992 = vmatpush1.bf16.msra.mxu0 %v4254_v10 }
  0xea   :  { %2027 = vmatpush1.bf16.msra.mxu1 %v4251_v9  ;;  %1993 = vmatprep.subr.bf16.mxu0 %v4262_v12  ;;  %v4336_v12 = vld [vmem:[#allocation2 + $0x290] ss:$8 sps:$4 sm:$0xff]  }
  0xeb   :  { %2028 = vmatprep.subr.bf16.mxu1 %v4259_v11  ;;  %v4333_v11 = vld [vmem:[#allocation2 + $0x360] ss:$8 sps:$4 sm:$0xff]  }
  0xed   :  { %1994 = vmatpush1.bf16.msra.mxu0 %v4260_v14  ;;  %v4341_v14 = vld [vmem:[#allocation2 + $0x374] ss:$8 sps:$4 sm:$0xff]  }
  0xee   :  { %2029 = vmatpush1.bf16.msra.mxu1 %v4257_v13  ;;  %1995 = vmatprep.subr.bf16.mxu0 %v4268_v16  ;;  %v4339_v16 = vld [vmem:[#allocation2 + $0x370] ss:$8 sps:$4 sm:$0xff]  }
  0xef   :  { %2030 = vmatprep.subr.bf16.mxu1 %v4265_v15  ;;  %v4344_v15 = vld [vmem:[#allocation2 + $0x2a4] ss:$8 sps:$4 sm:$0xff]  }
  0xf1   :  { %1996 = vmatpush1.bf16.msra.mxu0 %v4266_v18  ;;  %v4347_v18 = vld [vmem:[#allocation2 + $0x384] ss:$8 sps:$4 sm:$0xff]  }
  0xf2   :  { %2031 = vmatpush1.bf16.msra.mxu1 %v4263_v17  ;;  %1997 = vmatprep.subr.bf16.mxu0 %v4274_v20  ;;  %v4342_v17 = vld [vmem:[#allocation2 + $0x2a0] ss:$8 sps:$4 sm:$0xff]  }
  0xf3   :  { %2032 = vmatprep.subr.bf16.mxu1 %v4271_v19  ;;  %v4350_v19 = vld [vmem:[#allocation2 + $0x2b4] ss:$8 sps:$4 sm:$0xff]   ;;  %v4345_v20 = vld [vmem:[#allocation2 + $0x380] ss:$8 sps:$4 sm:$0xff]  }
  0xf5   :  { %1998 = vmatpush1.bf16.msra.mxu0 %v4272_v23  ;;  %v4353_v23 = vld [vmem:[#allocation2 + $0x394] ss:$8 sps:$4 sm:$0xff]  }
  0xf6   :  { %2033 = vmatpush1.bf16.msra.mxu1 %v4269_v22  ;;  %2049 = vmatprep.subr.bf16.mxu0 %v4282_v25  ;;  %v4348_v22 = vld [vmem:[#allocation2 + $0x2b0] ss:$8 sps:$4 sm:$0xff]  }
  0xf7   :  { %2034 = vmatprep.subr.bf16.mxu1 %v4279_v24  ;;  %v4356_v24 = vld [vmem:[#allocation2 + $0x2c4] ss:$8 sps:$4 sm:$0xff]   ;;  %v4351_v25 = vld [vmem:[#allocation2 + $0x390] ss:$8 sps:$4 sm:$0xff]  }
  0xf8   :  { %2000 = vmatmul.mubr.bf16.vlgmr.msra.gmra.mrb[8].mxu0 %v3650_v26  ;;  %v4354_v26 = vld [vmem:[#allocation2 + $0x2c0] ss:$8 sps:$4 sm:$0xff]  }
  0xf9   :  { %2050 = vmatpush1.bf16.msra.mxu0 %v4280_v29  ;;  %2081 = vmatprep.mubr.bf16.mxu0 %v3655_v32  ;;  %v4362_v29 = vld [vmem:[#allocation2 + $0x2d4] ss:$8 sps:$4 sm:$0xff]  }
  0xfa   :  { %2035 = vmatpush1.bf16.msra.mxu1 %v4277_v28  ;;  %2051 = vmatprep.subr.bf16.mxu0 %v4288_v31  ;;  %v4359_v28 = vld [vmem:[#allocation2 + $0x3a4] ss:$8 sps:$4 sm:$0xff]   ;;  %v4360_v31 = vld [vmem:[#allocation2 + $0x2d0] ss:$8 sps:$4 sm:$0xff]   ;;  %v4365_v32 = vld [vmem:[#allocation2 + $0x3b4] ss:$8 sps:$4 sm:$0xff]  }
  0xfb   :  { %2036 = vmatprep.subr.bf16.mxu1 %v4285_v30  ;;  %v4357_v30 = vld [vmem:[#allocation2 + $0x3a0] ss:$8 sps:$4 sm:$0xff]  }
  0xfd   :  { %2052 = vmatpush1.bf16.msra.mxu0 %v4286_v33  ;;  %v4363_v33 = vld [vmem:[#allocation2 + $0x3b0] ss:$8 sps:$4 sm:$0xff]  }
  0xfe   :  { %2037 = vmatpush1.bf16.msra.mxu1 %v4283_v21  ;;  %2053 = vmatprep.subr.bf16.mxu0 %v4294_v36  ;;  %v4368_v21 = vld [vmem:[#allocation2 + $0x2e4] ss:$8 sps:$4 sm:$0xff]  }
  0xff   :  { %2038 = vmatprep.subr.bf16.mxu1 %v4291_v34  ;;  %v4366_v34 = vld [vmem:[#allocation2 + $0x2e0] ss:$8 sps:$4 sm:$0xff]   ;;  %v4371_v36 = vld [vmem:[#allocation2 + $0x3c4] ss:$8 sps:$4 sm:$0xff]  }
 0x101   :  { %2054 = vmatpush1.bf16.msra.mxu0 %v4292_v38  ;;  %v4369_v38 = vld [vmem:[#allocation2 + $0x3c0] ss:$8 sps:$4 sm:$0xff]  }
 0x102   :  { %2039 = vmatpush1.bf16.msra.mxu1 %v4289_v37  ;;  %2055 = vmatprep.subr.bf16.mxu0 %v4302_v40  ;;  %v4374_v37 = vld [vmem:[#allocation2 + $0x2f4] ss:$8 sps:$4 sm:$0xff]  }
 0x103   :  { %2090 = vmatprep.subr.bf16.mxu1 %v4299_v39  ;;  %v4372_v39 = vld [vmem:[#allocation2 + $0x2f0] ss:$8 sps:$4 sm:$0xff]   ;;  %v4379_v40 = vld [vmem:[#allocation2 + $0x3d4] ss:$8 sps:$4 sm:$0xff]  }
 0x105   :  { %2041 = vmatmul.mubr.bf16.vlgmr.msra.gmra.mrb[16].mxu1 %v3652_v41  ;;  %2056 = vmatpush1.bf16.msra.mxu0 %v4300_v44  ;;  %v3654_v41 = vcombine.low %v4714_v27, %v4714_v27  ;;  %v4382_v44 = vld [vmem:[#allocation2 + $0x3e4] ss:$8 sps:$4 sm:$0xff]  }
 0x106   :  { %2091 = vmatpush1.bf16.msra.mxu1 %v4297_v43  ;;  %2057 = vmatprep.subr.bf16.mxu0 %v4308_v46  ;;  %v4377_v43 = vld [vmem:[#allocation2 + $0x3d0] ss:$8 sps:$4 sm:$0xff]   ;;  %v4385_v46 = vld [vmem:[#allocation2 + $0x3f4] ss:$8 sps:$4 sm:$0xff]  }
 0x107   :  { %2092 = vmatprep.subr.bf16.mxu1 %v4305_v45  ;;  %2122 = vmatprep.mubr.bf16.mxu1 %v3657_v47  ;;  %v4380_v45 = vld [vmem:[#allocation2 + $0x3e0] ss:$8 sps:$4 sm:$0xff]   ;;  %v4383_v47 = vld [vmem:[#allocation2 + $0x3f0] ss:$8 sps:$4 sm:$0xff]  }
 0x109   :  { %2058 = vmatpush1.bf16.msra.mxu0 %v4306_v48 }
 0x10a   :  { %2093 = vmatpush1.bf16.msra.mxu1 %v4303_v35  ;;  %2059 = vmatprep.subr.bf16.mxu0 %v4314_v50  ;;  %v3656_v35 = vcombine.low %v4723_v42, %v4723_v42  ;;  %v4389_v42 = vld [vmem:[%s4874_s8] sm:$0xff]  }
 0x10b   :  { %2094 = vmatprep.subr.bf16.mxu1 %v4311_v49 }
 0x10d   :  { %2060 = vmatpush1.bf16.msra.mxu0 %v4312_v52 }
 0x10e   :  { %2095 = vmatpush1.bf16.msra.mxu1 %v4309_v51  ;;  %2061 = vmatprep.subr.bf16.mxu0 %v4320_v54 }
 0x10f   :  { %2096 = vmatprep.subr.bf16.mxu1 %v4317_v53 }
 0x110   :  { %v4727_v59 = vpop.f32.mrb[0].mxu1 }
 0x111   :  { %v4729_v60 = vpop.f32.mrb[1].mxu1  ;;  %2062 = vmatpush1.bf16.msra.mxu0 %v4318_v56 }
 0x112   :  { %2097 = vmatpush1.bf16.msra.mxu1 %v4315_v55  ;;  %v167_v61 = vpop.f32.mrb[2].mxu1  ;;  %2063 = vmatprep.subr.bf16.mxu0 %v4326_v58  ;;  %v4391_v58 = vld [vmem:[%s4874_s8 + $0x8] sm:$0xff]  }
 0x113   :  { %v168_v1 = vpop.f32.mrb[3].mxu1  ;;  %2098 = vmatprep.subr.bf16.mxu1 %v4323_v57  ;;  %v4388_v57 = vld [vmem:[%s4874_s8 + $0x40] sm:$0xff]   ;;  %v4392_v61 = vld [vmem:[%s4874_s8 + $0x50] sm:$0xff]  }
 0x115   :  { %2064 = vmatpush1.bf16.msra.mxu0 %v4324_v63  ;;  %v4393_v63 = vld [vmem:[%s4874_s8 + $0x10] sm:$0xff]  }
 0x116   :  { %2099 = vmatpush1.bf16.msra.mxu1 %v4321_v62  ;;  %2065 = vmatprep.subr.bf16.mxu0 %v4332_v3 }
 0x117   :  { %2100 = vmatprep.subr.bf16.mxu1 %v4329_v2 }
 0x118   :  { %v4731_v8 = vpop.f32.mrb[4].mxu1 }
 0x119   :  { %v4733_v9 = vpop.f32.mrb[5].mxu1  ;;  %2066 = vmatpush1.bf16.msra.mxu0 %v4330_v5  ;;  %v4394_v5 = vld [vmem:[%s4874_s8 + $0x58] sm:$0xff]  }
 0x11a   :  { %2101 = vmatpush1.bf16.msra.mxu1 %v4327_v4  ;;  %v208_v10 = vpop.f32.mrb[6].mxu1  ;;  %2067 = vmatprep.subr.bf16.mxu0 %v4338_v7 }
 0x11b   :  { %v209_v13 = vpop.f32.mrb[7].mxu1  ;;  %2102 = vmatprep.subr.bf16.mxu1 %v4335_v6  ;;  %v4395_v6 = vld [vmem:[%s4874_s8 + $0x18] sm:$0xff]   ;;  %v4396_v10 = vld [vmem:[%s4874_s8 + $0x60] sm:$0xff]  }
 0x11d   :  { %2068 = vmatpush1.bf16.msra.mxu0 %v4336_v12  ;;  %v4398_v12 = vld [vmem:[%s4874_s8 + $0x68] sm:$0xff]  }
 0x11e   :  { %2103 = vmatpush1.bf16.msra.mxu1 %v4333_v11  ;;  %2069 = vmatprep.subr.bf16.mxu0 %v4344_v15  ;;  %v4397_v11 = vld [vmem:[%s4874_s8 + $0x20] sm:$0xff]  }
 0x11f   :  { %2104 = vmatprep.subr.bf16.mxu1 %v4341_v14  ;;  %v4399_v14 = vld [vmem:[%s4874_s8 + $0x28] sm:$0xff]  }
 0x121   :  { %2070 = vmatpush1.bf16.msra.mxu0 %v4342_v17 }
 0x122   :  { %2105 = vmatpush1.bf16.msra.mxu1 %v4339_v16  ;;  %2071 = vmatprep.subr.bf16.mxu0 %v4350_v19 }
 0x123   :  { %2106 = vmatprep.subr.bf16.mxu1 %v4347_v18 }
 0x125   :  { %2072 = vmatpush1.bf16.msra.mxu0 %v4348_v22  ;;  %v4401_v22 = vld [vmem:[%s4874_s8 + $0x30] sm:$0xff]  }
 0x126   :  { %2107 = vmatpush1.bf16.msra.mxu1 %v4345_v20  ;;  %2073 = vmatprep.subr.bf16.mxu0 %v4356_v24  ;;  %v4400_v20 = vld [vmem:[%s4874_s8 + $0x70] sm:$0xff]   ;;  %v4403_v24 = vld [vmem:[%s4874_s8 + $0x38] sm:$0xff]  }
 0x127   :  { %2108 = vmatprep.subr.bf16.mxu1 %v4353_v23  ;;  %v4402_v23 = vld [vmem:[%s4874_s8 + $0x78] sm:$0xff]  }
 0x129   :  { %2074 = vmatpush1.bf16.msra.mxu0 %v4354_v26 }
 0x12a   :  { %2109 = vmatpush1.bf16.msra.mxu1 %v4351_v25  ;;  %2075 = vmatprep.subr.bf16.mxu0 %v4362_v29  ;;  %v2329_v25 = vld [vmem:[%s4869_s3] sm:$0xf] }
 0x12b   :  { %2110 = vmatprep.subr.bf16.mxu1 %v4359_v28  ;;  %v2330_v26 = vunpack.c.l.bf16 %v2329_v25 }
 0x12d   :  { %2076 = vmatpush1.bf16.msra.mxu0 %v4360_v31  ;;  %2332 = vrot.lane.b32.xlu0 %v2330_v26, %s4520_s21 }
 0x12e   :  { %2111 = vmatpush1.bf16.msra.mxu1 %v4357_v30  ;;  %2077 = vmatprep.subr.bf16.mxu0 %v4368_v21 }
 0x12f   :  { %2112 = vmatprep.subr.bf16.mxu1 %v4365_v32 }
 0x131   :  { %2078 = vmatpush1.bf16.msra.mxu0 %v4366_v34 }
 0x132   :  { %2113 = vmatpush1.bf16.msra.mxu1 %v4363_v33  ;;  %2079 = vmatprep.subr.bf16.mxu0 %v4374_v37 }
 0x133   :  { %2114 = vmatprep.subr.bf16.mxu1 %v4371_v36 }
 0x135   :  { %2080 = vmatpush1.bf16.msra.mxu0 %v4372_v39 }
 0x136   :  { %2115 = vmatpush1.bf16.msra.mxu1 %v4369_v38  ;;  %3952 = vmatprep.subr.bf16.mxu0 %v4388_v57 }
 0x137   :  { %2116 = vmatprep.subr.bf16.mxu1 %v4379_v40 }
 0x138   :  { %2082 = vmatmul.mubr.bf16.vlgmr.msra.gmra.mrb[12].mxu0 %v3654_v41 }
 0x139   :  { %3953 = vmatpush3.bf16.msra.mxu0 %v4389_v42 }
 0x13a   :  { %2117 = vmatpush1.bf16.msra.mxu1 %v4377_v43 }
 0x13b   :  { %2118 = vmatprep.subr.bf16.mxu1 %v4382_v44  ;;  %v2135_v44 = vlaneseq }
 0x13e   :  { %2119 = vmatpush1.bf16.msra.mxu1 %v4380_v45 }
 0x13f   :  { %2120 = vmatprep.subr.bf16.mxu1 %v4385_v46 }
 0x142   :  { %2121 = vmatpush1.bf16.msra.mxu1 %v4383_v47 }
 0x145   :  { %2123 = vmatmul.mubr.bf16.vlgmr.msra.gmra.mrb[20].mxu1 %v3656_v35  ;;  %v4792_v35 = vshrl.u32 %v2135_v44, 7 }
 0x146   :  { %2411 = vmatprep.mubr.bf16.mxu1 %v4521_v0  ;;  %v4390_v0 = vld [vmem:[%s4874_s8 + $0x48] sm:$0xff]  }
 0x147   :  { %3954 = vmatprep.subr.bf16.mxu0 %v4390_v0 }
 0x148   :  { %3955 = vmatpush3.bf16.msra.mxu0 %v4391_v58 }
 0x149   :  { %3956 = vmatprep.subr.bf16.mxu0 %v4392_v61 }
 0x14b   :  { %v1169_v27 = vpop.f32.mrb[0].mxu0 }
 0x14c   :  { %v1171_v48 = vpop.f32.mrb[1].mxu0  ;;  %3957 = vmatpush3.bf16.msra.mxu0 %v4393_v63 }
 0x14d   :  { %v1173_v49 = vpop.f32.mrb[2].mxu0  ;;  %3958 = vmatprep.subr.bf16.mxu0 %v4394_v5 }
 0x14e   :  { %v1174_v50 = vpop.f32.mrb[3].mxu0  ;;  %v4801_v49 = vsub.s32 1, %v4792_v35 }
 0x150   :  { %3959 = vmatpush3.bf16.msra.mxu0 %v4395_v6 }
 0x151   :  { %3960 = vmatprep.subr.bf16.mxu0 %v4396_v10 }
 0x154   :  { %3961 = vmatpush3.bf16.msra.mxu0 %v4397_v11 }
 0x155   :  { %3962 = vmatprep.subr.bf16.mxu0 %v4398_v12 }
 0x158   :  { %v1210_v51 = vpop.f32.mrb[8].mxu1  ;;  %3963 = vmatpush3.bf16.msra.mxu0 %v4399_v14  ;;  %v4409_v14 = vld [vmem:[%s4876_s10 + $0x14] ss:$8 sps:$4 sm:$0xff]  }
 0x159   :  { %v1211_v52 = vadd.f32 %v1210_v51, %v1169_v27  ;;  %v1212_v53 = vpop.f32.mrb[9].mxu1  ;;  %3964 = vmatprep.subr.bf16.mxu0 %v4400_v20  ;;  %v4795_v27 = vsub.s32 0, %v4792_v35  ;;  %v2442_v20 = vld [vmem:[#allocation6 + $0x20] sm:$0xff] }
 0x15a   :  { %v1213_v54 = vadd.f32 %v1212_v53, %v1171_v48  ;;  %v1214_v55 = vpop.f32.mrb[10].mxu1  ;;  %v2133_v48 = vld [vmem:[%s4873_s7] sm:$0x3] }
 0x15b   :  { %v1215_v56 = vpop.f32.mrb[11].mxu1  ;;  %v2142_v55 = vrot.slane %v2133_v48, %v4801_v49 }
 0x15c   :  { %3965 = vmatpush3.bf16.msra.mxu0 %v4401_v22  ;;  %v2439_v22 = vld [vmem:[#allocation6 + $0x8] sm:$0xff] }
 0x15d   :  { %3966 = vmatprep.subr.bf16.mxu0 %v4402_v23 }
 0x160   :  { %3967 = vmatpush3.bf16.msra.mxu0 %v4403_v24  ;;  %v2443_v24 = vld [vmem:[#allocation6 + $0x28] sm:$0xff] }
 0x161   :  { %v3810_v25 = vcombine.low %v2439_v22, %v2443_v24  ;;  %v3811_v26 = vcombine.high %v2439_v22, %v2443_v24  ;;  %v2490_v22 = vld [vmem:[#allocation6 + $0x1a0] sm:$0xff] }
 0x163   :  { %3289 = vmatprep.subr.bf16.mxu0 %v3811_v26 }
 0x18b   :  { %v1251_v62 = vpop.f32.mrb[4].mxu0 }
 0x18c   :  { %v1252_v1 = vadd.f32 %v1251_v62, %v1211_v52  ;;  %v1253_v2 = vpop.f32.mrb[5].mxu0  ;;  %v2138_v52 = vrot.slane %v2133_v48, %v4795_v27  ;;  %v2475_v48 = vld [vmem:[#allocation6 + $0x128] sm:$0xff] }
 0x18d   :  { %v1254_v3 = vadd.f32 %v1253_v2, %v1213_v54  ;;  %v1255_v4 = vpop.f32.mrb[6].mxu0 }
 0x18e   :  { %v1256_v7 = vpop.f32.mrb[7].mxu0  ;;  %v4406_v4 = vld [vmem:[%s4876_s10 + $0x4] ss:$8 sps:$4 sm:$0xff]  }
 0x18f   :  { %2379 = vmatprep.subr.bf16.mxu1 %v4406_v4  ;;  %v2474_v4 = vld [vmem:[#allocation6 + $0x120] sm:$0xff] }
 0x198   :  { %v1292_v13 = vpop.f32.mrb[12].mxu1 }
 0x199   :  { %v1293_v15 = vadd.f32 %v1292_v13, %v1252_v1  ;;  %v1294_v16 = vpop.f32.mrb[13].mxu1 }
 0x19a   :  { %v1295_v17 = vadd.f32 %v1294_v16, %v1254_v3  ;;  %v1296_v18 = vpop.f32.mrb[14].mxu1  ;;  %v4404_v3 = vld [vmem:[%s4876_s10] ss:$8 sps:$4 sm:$0xff]  }
 0x19b   :  { %v1297_v19 = vpop.f32.mrb[15].mxu1  ;;  %2380 = vmatpush1.bf16.msra.mxu1 %v4404_v3  ;;  %v2470_v3 = vld [vmem:[#allocation6 + $0x100] sm:$0xff] }
 0x19c   :  { %2381 = vmatprep.subr.bf16.mxu1 %v4409_v14  ;;  %v2438_v19 = vld [vmem:[#allocation6] sm:$0xff] }
 0x19d   :  { %v3809_v23 = vcombine.high %v2438_v19, %v2442_v20 }
 0x19f   :  { %v2333_v16 = vpop.permute.xlu0 %2332 }
 0x1cb   :  { %v2001_v28 = vpop.f32.mrb[8].mxu0 }
 0x1cc   :  { %v2002_v29 = vadd.f32 %v2001_v28, %v1293_v15  ;;  %v2003_v30 = vpop.f32.mrb[9].mxu0  ;;  %v4407_v15 = vld [vmem:[%s4876_s10 + $0x10] ss:$8 sps:$4 sm:$0xff]   ;;  %v2447_v28 = vld [vmem:[#allocation6 + $0x48] sm:$0xff]  ;;  %s4523_s10 = smov 64  }
 0x1cd   :  { %v2004_v31 = vadd.f32 %v2003_v30, %v1295_v17  ;;  %v2005_v32 = vpop.f32.mrb[10].mxu0  ;;  %2382 = vmatpush1.bf16.msra.mxu1 %v4407_v15  ;;  %v3840_v15 = vcombine.low %v2470_v3, %v2474_v4 }
 0x1ce   :  { %v2006_v21 = vpop.f32.mrb[11].mxu0  ;;  %3248 = vmatprep.subr.bf16.mxu1 %v3809_v23  ;;  %v2459_v32 = vld [vmem:[#allocation6 + $0xa8] sm:$0xff] }
 0x1d8   :  { %v2042_v33 = vpop.f32.mrb[16].mxu1 }
 0x1d9   :  { %v2043_v34 = vadd.f32 %v2042_v33, %v2002_v29  ;;  %v2044_v36 = vpop.f32.mrb[17].mxu1  ;;  %v2451_v29 = vld [vmem:[#allocation6 + $0x68] sm:$0xff] }
 0x1da   :  { %v2045_v37 = vadd.f32 %v2044_v36, %v2004_v31  ;;  %v2046_v38 = vpop.f32.mrb[18].mxu1  ;;  %v3819_v30 = vcombine.high %v2447_v28, %v2451_v29  ;;  %v2455_v31 = vld [vmem:[#allocation6 + $0x88] sm:$0xff]  ;;  %v3818_v21 = vcombine.low %v2447_v28, %v2451_v29 }
 0x1db   :  { %v2047_v39 = vpop.f32.mrb[19].mxu1  ;;  %v3827_v33 = vcombine.high %v2455_v31, %v2459_v32  ;;  %v2467_v36 = vld [vmem:[#allocation6 + $0xe8] sm:$0xff]  ;;  %v2446_v38 = vld [vmem:[#allocation6 + $0x40] sm:$0xff] }
 0x1dc   :  { %v2450_v39 = vld [vmem:[#allocation6 + $0x60] sm:$0xff]  ;;  %v2511_v28 = vld [vmem:[#allocation6 + $0x248] sm:$0xff] }
 0x1dd   :  { %v2515_v29 = vld [vmem:[#allocation6 + $0x268] sm:$0xff] }
 0x20b   :  { %v2083_v40 = vpop.f32.mrb[12].mxu0 }
 0x20c   :  { %v2084_v41 = vadd.f32 %v2083_v40, %v2043_v34  ;;  %v2085_v43 = vpop.f32.mrb[13].mxu0  ;;  %v2463_v34 = vld [vmem:[#allocation6 + $0xc8] sm:$0xff] }
 0x20d   :  { %v2086_v45 = vadd.f32 %v2085_v43, %v2045_v37  ;;  %v2087_v46 = vpop.f32.mrb[14].mxu0  ;;  %v3808_v43 = vcombine.low %v2438_v19, %v2442_v20  ;;  %v3835_v44 = vcombine.high %v2463_v34, %v2467_v36  ;;  %v2507_v19 = vld [vmem:[#allocation6 + $0x228] sm:$0xff]  ;;  %v2486_v20 = vld [vmem:[#allocation6 + $0x180] sm:$0xff] }
 0x20e   :  { %v2088_v47 = vpop.f32.mrb[15].mxu0  ;;  %v3817_v46 = vcombine.high %v2446_v38, %v2450_v39  ;;  %v3857_v26 = vcombine.high %v2486_v20, %v2490_v22 }
 0x20f   :  { %v2471_v47 = vld [vmem:[#allocation6 + $0x108] sm:$0xff] }
 0x218   :  { %v2124_v50 = vpop.f32.mrb[20].mxu1 }
 0x219   :  { %v2125_v51 = vadd.f32 %v2124_v50, %v2084_v41  ;;  %v2126_v53 = vpop.f32.mrb[21].mxu1  ;;  %v3826_v41 = vcombine.low %v2455_v31, %v2459_v32  ;;  %v2454_v50 = vld [vmem:[#allocation6 + $0x80] sm:$0xff] }
 0x21a   :  { %v2127_v54 = vadd.f32 %v2126_v53, %v2086_v45  ;;  %v2128_v56 = vpop.f32.mrb[22].mxu1  ;;  %v3816_v53 = vcombine.low %v2446_v38, %v2450_v39  ;;  %v2498_v31 = vld [vmem:[#allocation6 + $0x1e0] sm:$0xff] }
 0x21b   :  { %v2131_v57 = vadd.f32 %v2125_v51, %v4727_v59  ;;  %v2129_v42 = vpop.f32.mrb[23].mxu1  ;;  %v2458_v51 = vld [vmem:[#allocation6 + $0xa0] sm:$0xff]  ;;  %v2479_v56 = vld [vmem:[#allocation6 + $0x148] sm:$0xff] }
 0x21c   :  { %v2132_v0 = vadd.f32 %v2127_v54, %v4729_v60  ;;  %v3786_v60 = vld [vmem:[%s4875_s9] ss:$0 sm:$0xff]  ;;  %s4522_s9 = smov 96   ;;  %v3843_v54 = vcombine.high %v2471_v47, %v2475_v48 }
 0x21d   :  { %v2145_v58 = vadd.f32 %v2138_v52, %v2131_v57  ;;  %v3834_v52 = vcombine.low %v2463_v34, %v2467_v36  ;;  %v2483_v57 = vld [vmem:[#allocation6 + $0x168] sm:$0xff]  ;;  %v2462_v42 = vld [vmem:[#allocation6 + $0xc0] sm:$0xff] }
 0x21e   :  { %v2146_v61 = vadd.f32 %v2142_v55, %v2132_v0  ;;  %v3825_v55 = vcombine.high %v2454_v50, %v2458_v51  ;;  %v2466_v0 = vld [vmem:[#allocation6 + $0xe0] sm:$0xff]  ;;  %v2519_v36 = vld [vmem:[#allocation6 + $0x288] sm:$0xff] }
 0x21f   :  { %v2147_v62 = vmax.f32 %v2145_v58, 0.0  ;;  %v3842_v58 = vcombine.low %v2471_v47, %v2475_v48  ;;  %v2502_v38 = vld [vmem:[#allocation6 + $0x200] sm:$0xff] }
 0x220   :  { %v2148_v63 = vmax.f32 %v2146_v61, 0.0  ;;  %v3824_v61 = vcombine.low %v2454_v50, %v2458_v51  ;;  %v2506_v39 = vld [vmem:[#allocation6 + $0x220] sm:$0xff] }
 0x221   :  { %v2149_v2 = vpack.c.bf16 %v2147_v62, %v2147_v62  ;;  %v3851_v62 = vcombine.high %v2479_v56, %v2483_v57  ;;  %v2510_v47 = vld [vmem:[#allocation6 + $0x240] sm:$0xff]  ;;  %v3872_v51 = vcombine.low %v2502_v38, %v2506_v39 }
 0x222   :  { %v2150_v1 = vpack.c.bf16 %v2148_v63, %v2148_v63  ;;  %v3833_v63 = vcombine.high %v2462_v42, %v2466_v0  ;;  %v2514_v48 = vld [vmem:[#allocation6 + $0x260] sm:$0xff] }
 0x224   :  { %2318 = vmatprep.mubr.bf16.mxu0 %v2150_v1  ;;  %v2487_v1 = vld [vmem:[#allocation6 + $0x188] sm:$0xff] }
 0x225   :  { %2319 = vmatmul.mubr.bf16.vlgmr.msra.gmra.mrb[16].mxu0 %v2149_v2  ;;  %v2491_v2 = vld [vmem:[#allocation6 + $0x1a8] sm:$0xff] }
 0x226   :  { %3290 = vmatpush1.bf16.msra.mxu0 %v3810_v25  ;;  %v3858_v14 = vcombine.low %v2487_v1, %v2491_v2 }
 0x227   :  { %3291 = vmatprep.subr.bf16.mxu0 %v3819_v30  ;;  %v2494_v30 = vld [vmem:[#allocation6 + $0x1c0] sm:$0xff] }
 0x228   :  { %v3865_v34 = vcombine.high %v2494_v30, %v2498_v31 }
 0x22a   :  { %3292 = vmatpush1.bf16.msra.mxu0 %v3818_v21  ;;  %v3856_v21 = vcombine.low %v2486_v20, %v2490_v22  ;;  %v2551_v20 = vld [vmem:[#allocation6 + $0x388] sm:$0xff] }
 0x22b   :  { %3293 = vmatprep.subr.bf16.mxu0 %v3827_v33  ;;  %v3883_v33 = vcombine.high %v2511_v28, %v2515_v29 }
 0x22e   :  { %3294 = vmatpush1.bf16.msra.mxu0 %v3826_v41  ;;  %v3864_v41 = vcombine.low %v2494_v30, %v2498_v31  ;;  %v2559_v30 = vld [vmem:[#allocation6 + $0x3c8] sm:$0xff] }
 0x22f   :  { %3295 = vmatprep.subr.bf16.mxu0 %v3835_v44  ;;  %v3873_v44 = vcombine.high %v2502_v38, %v2506_v39  ;;  %v2441_v38 = vld [vmem:[#allocation6 + $0x18] sm:$0xff] }
 0x232   :  { %3296 = vmatpush1.bf16.msra.mxu0 %v3834_v52 }
 0x233   :  { %3297 = vmatprep.subr.bf16.mxu0 %v3843_v54  ;;  %v2535_v54 = vld [vmem:[#allocation6 + $0x308] sm:$0xff] }
 0x236   :  { %3298 = vmatpush1.bf16.msra.mxu0 %v3842_v58 }
 0x237   :  { %3299 = vmatprep.subr.bf16.mxu0 %v3851_v62  ;;  %v2543_v62 = vld [vmem:[#allocation6 + $0x348] sm:$0xff] }
 0x2f8   :  { %v3968_v59 = vpop.f32.mrb[16].mxu0 }
 0x2f9   :  { %v3969_v5 = vpop.f32.mrb[17].mxu0 }
 0x2fa   :  { %v3970_v6 = vadd.f32 %v3969_v5, %v3968_v59  ;;  %v3971_v7 = vpop.f32.mrb[18].mxu0  ;;  %v3850_v59 = vcombine.low %v2479_v56, %v2483_v57  ;;  %v3859_v5 = vcombine.high %v2487_v1, %v2491_v2  ;;  %v2518_v56 = vld [vmem:[#allocation6 + $0x280] sm:$0xff] }
 0x2fb   :  { %v3972_v10 = vpop.f32.mrb[19].mxu0  ;;  %v2495_v7 = vld [vmem:[#allocation6 + $0x1c8] sm:$0xff]  ;;  %v2522_v57 = vld [vmem:[#allocation6 + $0x2a0] sm:$0xff] }
 0x2fc   :  { %v4816_v11 = vadd.f32 %v3970_v6, %v3786_v60  ;;  %v3832_v60 = vcombine.low %v2462_v42, %v2466_v0  ;;  %v3841_v6 = vcombine.high %v2470_v3, %v2474_v4  ;;  %v2499_v10 = vld [vmem:[#allocation6 + $0x1e8] sm:$0xff]  ;;  %3300 = vmatpush1.bf16.msra.mxu0 %v3850_v59  ;;  %v3880_v0 = vcombine.low %v2510_v47, %v2514_v48  ;;  %v2526_v1 = vld [vmem:[#allocation6 + $0x2c0] sm:$0xff] }
 0x2fd   :  { %3301 = vmatprep.subr.bf16.mxu0 %v3859_v5  ;;  %v3866_v23 = vcombine.low %v2495_v7, %v2499_v10  ;;  %v2530_v2 = vld [vmem:[#allocation6 + $0x2e0] sm:$0xff]  ;;  %v3888_v4 = vcombine.low %v2518_v56, %v2522_v57 }
 0x2fe   :  { %v2326_v12 = vmul.f32 0.5, %v4816_v11  ;;  %v2534_v5 = vld [vmem:[#allocation6 + $0x300] sm:$0xff] }
 0x300   :  { %v2327_v13 = vmul.f32 1.442695, %v2326_v12  ;;  %v2478_v12 = vld [vmem:[#allocation6 + $0x140] sm:$0xff]  ;;  %3302 = vmatpush1.bf16.msra.mxu0 %v3858_v14 }
 0x301   :  { %v2546_v14 = vld [vmem:[#allocation6 + $0x360] sm:$0xff] }
 0x302   :  { %4410 = vpow2.f32 %v2327_v13  ;;  %v2482_v13 = vld [vmem:[#allocation6 + $0x160] sm:$0xff] }
 0x303   :  { %v3848_v24 = vcombine.low %v2478_v12, %v2482_v13 }
 0x30c   :  { %v4411_v17 = vpop.eup %4410 }
 0x30d   :  { %v2335_v18 = vmul.f32 %v4411_v17, %v2333_v16  ;;  %v3867_v16 = vcombine.high %v2495_v7, %v2499_v10  ;;  %v3849_v17 = vcombine.high %v2478_v12, %v2482_v13  ;;  %v3896_v10 = vcombine.low %v2526_v1, %v2530_v2  ;;  %v2542_v13 = vld [vmem:[#allocation6 + $0x340] sm:$0xff] }
 0x30f   :  { %2337 = vrot.lane.b32.xlu0 %v2335_v18, %s4522_s9  ;;  %v2503_v18 = vld [vmem:[#allocation6 + $0x208] sm:$0xff]  ;;  %3303 = vmatprep.subr.bf16.mxu0 %v3867_v16  ;;  %v3913_v16 = vcombine.high %v2542_v13, %v2546_v14 }
 0x310   :  { %v3875_v25 = vcombine.high %v2503_v18, %v2507_v19  ;;  %3304 = vmatpush1.bf16.msra.mxu0 %v3866_v23  ;;  %v3874_v32 = vcombine.low %v2503_v18, %v2507_v19  ;;  %v2550_v18 = vld [vmem:[#allocation6 + $0x380] sm:$0xff]  ;;  %v2555_v23 = vld [vmem:[#allocation6 + $0x3a8] sm:$0xff] }
 0x311   :  { %v2554_v19 = vld [vmem:[#allocation6 + $0x3a0] sm:$0xff] }
 0x312   :  { %3305 = vmatprep.subr.bf16.mxu0 %v3875_v25  ;;  %v3921_v22 = vcombine.high %v2550_v18, %v2554_v19  ;;  %v3922_v25 = vcombine.low %v2551_v20, %v2555_v23 }
 0x314   :  { %3306 = vmatpush1.bf16.msra.mxu0 %v3874_v32  ;;  %v2563_v32 = vld [vmem:[#allocation6 + $0x3e8] sm:$0xff] }
 0x315   :  { %3307 = vmatprep.subr.bf16.mxu0 %v3883_v33  ;;  %v3930_v33 = vcombine.low %v2559_v30, %v2563_v32 }
 0x381   :  { %v2338_v37 = vpop.permute.xlu0 %2337 }
 0x382   :  { %v2340_v40 = vadd.f32 %v2338_v37, %v4816_v11  ;;  %v2523_v37 = vld [vmem:[#allocation6 + $0x2a8] sm:$0xff] }
 0x383   :  { %v3890_v50 = vcombine.low %v2519_v36, %v2523_v37 }
 0x384   :  { %v2350_v45 = vpack.c.bf16 %v2340_v40, %v2340_v40  ;;  %2342 = vrot.lane.b32.xlu1 %v2340_v40, %s4523_s10  ;;  %v3882_v40 = vcombine.low %v2511_v28, %v2515_v29  ;;  %v2558_v28 = vld [vmem:[#allocation6 + $0x3c0] sm:$0xff] }
 0x385   :  { %v2562_v29 = vld [vmem:[#allocation6 + $0x3e0] sm:$0xff] }
 0x386   :  { %3807 = vmatmul.mubr.msk.bf16.vlgmr.msra.gmra.mrb[24].mxu1 %vm2375_vm2, %v2350_v45  ;;  %v2527_v45 = vld [vmem:[#allocation6 + $0x2c8] sm:$0xff]  ;;  %3308 = vmatpush1.bf16.msra.mxu0 %v3882_v40  ;;  %v3929_v31 = vcombine.high %v2558_v28, %v2562_v29  ;;  %v2445_v40 = vld [vmem:[#allocation6 + $0x38] sm:$0xff] }
 0x387   :  { %3249 = vmatpush1.bf16.msra.mxu1 %v3808_v43  ;;  %v3891_v43 = vcombine.high %v2519_v36, %v2523_v37  ;;  %v2440_v36 = vld [vmem:[#allocation6 + $0x10] sm:$0xff] }
 0x388   :  { %3250 = vmatprep.subr.bf16.mxu1 %v3817_v46  ;;  %v2531_v46 = vld [vmem:[#allocation6 + $0x2e8] sm:$0xff]  ;;  %v2444_v37 = vld [vmem:[#allocation6 + $0x30] sm:$0xff] }
 0x389   :  { %3309 = vmatprep.subr.bf16.mxu0 %v3891_v43  ;;  %v3899_v52 = vcombine.high %v2527_v45, %v2531_v46  ;;  %v3898_v42 = vcombine.low %v2527_v45, %v2531_v46  ;;  %v3813_v39 = vcombine.high %v2440_v36, %v2444_v37  ;;  %v3814_v43 = vcombine.low %v2441_v38, %v2445_v40 }
 0x38a   :  { %3310 = vmatpush1.bf16.msra.mxu0 %v3890_v50 }
 0x38b   :  { %3251 = vmatpush1.bf16.msra.mxu1 %v3816_v53  ;;  %v3881_v53 = vcombine.high %v2510_v47, %v2514_v48  ;;  %3311 = vmatprep.subr.bf16.mxu0 %v3899_v52  ;;  %v2420_v48 = vld [vmem:[%s4877_s11] sm:$0x3] }
 0x38c   :  { %3252 = vmatprep.subr.bf16.mxu1 %v3825_v55  ;;  %v2539_v55 = vld [vmem:[#allocation6 + $0x328] sm:$0xff]  ;;  %v2425_v50 = vrot.slane %v2420_v48, %v4795_v27  ;;  %v2429_v52 = vrot.slane %v2420_v48, %v4801_v49  ;;  %v2496_v48 = vld [vmem:[#allocation6 + $0x1d0] sm:$0xff] }
 0x38d   :  { %v3907_v58 = vcombine.high %v2535_v54, %v2539_v55  ;;  %v3906_v3 = vcombine.low %v2535_v54, %v2539_v55 }
 0x38e   :  { %3312 = vmatpush1.bf16.msra.mxu0 %v3898_v42 }
 0x38f   :  { %3253 = vmatpush1.bf16.msra.mxu1 %v3824_v61  ;;  %v3889_v61 = vcombine.high %v2518_v56, %v2522_v57  ;;  %3313 = vmatprep.subr.bf16.mxu0 %v3907_v58 }
 0x390   :  { %3254 = vmatprep.subr.bf16.mxu1 %v3833_v63  ;;  %v2547_v63 = vld [vmem:[#allocation6 + $0x368] sm:$0xff] }
 0x391   :  { %v3915_v59 = vcombine.high %v2543_v62, %v2547_v63  ;;  %v3914_v7 = vcombine.low %v2543_v62, %v2547_v63  ;;  %v2452_v62 = vld [vmem:[#allocation6 + $0x70] sm:$0xff]  ;;  %v2449_v63 = vld [vmem:[#allocation6 + $0x58] sm:$0xff] }
 0x392   :  { %3314 = vmatpush1.bf16.msra.mxu0 %v3906_v3 }
 0x393   :  { %3255 = vmatpush1.bf16.msra.mxu1 %v3832_v60  ;;  %v3897_v60 = vcombine.high %v2526_v1, %v2530_v2  ;;  %3315 = vmatprep.subr.bf16.mxu0 %v3915_v59  ;;  %v2453_v1 = vld [vmem:[#allocation6 + $0x78] sm:$0xff] }
 0x394   :  { %3256 = vmatprep.subr.bf16.mxu1 %v3841_v6  ;;  %v2538_v6 = vld [vmem:[#allocation6 + $0x320] sm:$0xff]  ;;  %v3823_v59 = vcombine.high %v2449_v63, %v2453_v1 }
 0x395   :  { %v3905_v12 = vcombine.high %v2534_v5, %v2538_v6 }
 0x396   :  { %3316 = vmatpush1.bf16.msra.mxu0 %v3914_v7  ;;  %v3822_v7 = vcombine.low %v2449_v63, %v2453_v1  ;;  %v2512_v1 = vld [vmem:[#allocation6 + $0x250] sm:$0xff] }
 0x397   :  { %3257 = vmatpush1.bf16.msra.mxu1 %v3840_v15  ;;  %v3904_v15 = vcombine.low %v2534_v5, %v2538_v6  ;;  %v2461_v5 = vld [vmem:[#allocation6 + $0xb8] sm:$0xff] }
 0x398   :  { %3258 = vmatprep.subr.bf16.mxu1 %v3849_v17  ;;  %v3912_v17 = vcombine.low %v2542_v13, %v2546_v14  ;;  %v2464_v13 = vld [vmem:[#allocation6 + $0xd0] sm:$0xff] }
 0x399   :  { %v2468_v14 = vld [vmem:[#allocation6 + $0xf0] sm:$0xff] }
 0x39b   :  { %3259 = vmatpush1.bf16.msra.mxu1 %v3848_v24  ;;  %v3920_v24 = vcombine.low %v2550_v18, %v2554_v19  ;;  %v3837_v19 = vcombine.high %v2464_v13, %v2468_v14 }
 0x39c   :  { %3260 = vmatprep.subr.bf16.mxu1 %v3857_v26  ;;  %v3923_v26 = vcombine.high %v2551_v20, %v2555_v23  ;;  %v2476_v23 = vld [vmem:[#allocation6 + $0x130] sm:$0xff] }
 0x39e   :  { %3317 = vmatprep.subr.bf16.mxu0 %v3923_v26  ;;  %v3836_v26 = vcombine.low %v2464_v13, %v2468_v14 }
 0x39f   :  { %3261 = vmatpush1.bf16.msra.mxu1 %v3856_v21  ;;  %3318 = vmatpush1.bf16.msra.mxu0 %v3922_v25  ;;  %v3928_v21 = vcombine.low %v2558_v28, %v2562_v29  ;;  %v2477_v25 = vld [vmem:[#allocation6 + $0x138] sm:$0xff] }
 0x3a0   :  { %3262 = vmatprep.subr.bf16.mxu1 %v3865_v34  ;;  %v3931_v34 = vcombine.high %v2559_v30, %v2563_v32  ;;  %v2484_v32 = vld [vmem:[#allocation6 + $0x170] sm:$0xff] }
 0x3a2   :  { %3319 = vmatprep.subr.bf16.mxu0 %v3931_v34 }
 0x3a3   :  { %3263 = vmatpush1.bf16.msra.mxu1 %v3864_v41  ;;  %3320 = vmatpush1.bf16.msra.mxu0 %v3930_v33  ;;  %v3812_v41 = vcombine.low %v2440_v36, %v2444_v37  ;;  %v2485_v33 = vld [vmem:[#allocation6 + $0x178] sm:$0xff] }
 0x3a4   :  { %3264 = vmatprep.subr.bf16.mxu1 %v3873_v44  ;;  %v3815_v44 = vcombine.high %v2441_v38, %v2445_v40  ;;  %v2492_v40 = vld [vmem:[#allocation6 + $0x1b0] sm:$0xff] }
 0x3a6   :  { %3371 = vmatprep.subr.bf16.mxu0 %v3815_v44 }
 0x3a7   :  { %3265 = vmatpush1.bf16.msra.mxu1 %v3872_v51 }
 0x3a8   :  { %3266 = vmatprep.subr.bf16.mxu1 %v3881_v53 }
 0x3ab   :  { %3267 = vmatpush1.bf16.msra.mxu1 %v3880_v0 }
 0x3ac   :  { %3268 = vmatprep.subr.bf16.mxu1 %v3889_v61  ;;  %v2448_v61 = vld [vmem:[#allocation6 + $0x50] sm:$0xff] }
 0x3ad   :  { %v3820_v6 = vcombine.low %v2448_v61, %v2452_v62 }
 0x3af   :  { %3269 = vmatpush1.bf16.msra.mxu1 %v3888_v4  ;;  %v2456_v4 = vld [vmem:[#allocation6 + $0x90] sm:$0xff] }
 0x3b0   :  { %3270 = vmatprep.subr.bf16.mxu1 %v3897_v60  ;;  %v2460_v60 = vld [vmem:[#allocation6 + $0xb0] sm:$0xff] }
 0x3b3   :  { %3271 = vmatpush1.bf16.msra.mxu1 %v3896_v10  ;;  %v3829_v10 = vcombine.high %v2456_v4, %v2460_v60 }
 0x3b4   :  { %3272 = vmatprep.subr.bf16.mxu1 %v3905_v12 }
 0x3b7   :  { %3273 = vmatpush1.bf16.msra.mxu1 %v3904_v15  ;;  %v2465_v15 = vld [vmem:[#allocation6 + $0xd8] sm:$0xff] }
 0x3b8   :  { %3274 = vmatprep.subr.bf16.mxu1 %v3913_v16  ;;  %v2469_v16 = vld [vmem:[#allocation6 + $0xf8] sm:$0xff] }
 0x3b9   :  { %v3839_v20 = vcombine.high %v2465_v15, %v2469_v16  ;;  %v3838_v28 = vcombine.low %v2465_v15, %v2469_v16 }
 0x3bb   :  { %3275 = vmatpush1.bf16.msra.mxu1 %v3912_v17  ;;  %v3828_v17 = vcombine.low %v2456_v4, %v2460_v60  ;;  %v2513_v4 = vld [vmem:[#allocation6 + $0x258] sm:$0xff] }
 0x3bc   :  { %3276 = vmatprep.subr.bf16.mxu1 %v3921_v22  ;;  %v2472_v22 = vld [vmem:[#allocation6 + $0x110] sm:$0xff] }
 0x3bd   :  { %v3845_v29 = vcombine.high %v2472_v22, %v2476_v23  ;;  %v3844_v34 = vcombine.low %v2472_v22, %v2476_v23 }
 0x3bf   :  { %3277 = vmatpush1.bf16.msra.mxu1 %v3920_v24  ;;  %v2473_v24 = vld [vmem:[#allocation6 + $0x118] sm:$0xff] }
 0x3c0   :  { %3278 = vmatprep.subr.bf16.mxu1 %v3929_v31  ;;  %v3847_v30 = vcombine.high %v2473_v24, %v2477_v25  ;;  %v2480_v31 = vld [vmem:[#allocation6 + $0x150] sm:$0xff]  ;;  %v3846_v36 = vcombine.low %v2473_v24, %v2477_v25 }
 0x3c1   :  { %v3853_v37 = vcombine.high %v2480_v31, %v2484_v32  ;;  %v3852_v44 = vcombine.low %v2480_v31, %v2484_v32 }
 0x3c3   :  { %3279 = vmatpush1.bf16.msra.mxu1 %v3928_v21  ;;  %v2481_v21 = vld [vmem:[#allocation6 + $0x158] sm:$0xff] }
 0x3c4   :  { %3330 = vmatprep.subr.bf16.mxu1 %v3813_v39  ;;  %v3855_v38 = vcombine.high %v2481_v21, %v2485_v33  ;;  %v2488_v39 = vld [vmem:[#allocation6 + $0x190] sm:$0xff] }
 0x3f6   :  { %v2343_v45 = vpop.permute.xlu1 %2342 }
 0x3f7   :  { %v2346_v46 = vsel %vm2345_vm3, %v4816_v11, %v2343_v45  ;;  %v3854_v45 = vcombine.low %v2481_v21, %v2485_v33 }
 0x3f8   :  { %v2348_v47 = vsel %vm2347_vm4, %v2346_v46, 0.0  ;;  %v3861_v46 = vcombine.high %v2488_v39, %v2492_v40 }
 0x3f9   :  { %2349 = vst [vmem:[%s4881_s15] sm:$0xff] %v2348_v47 }
 0x459   :  { %v2413_v51 = vpop.f32.mrb[24].mxu1 }
 0x45a   :  { %v2414_v53 = vadd.f32 %v2413_v51, %v4731_v8  ;;  %v2415_v54 = vpop.f32.mrb[25].mxu1  ;;  %v3821_v8 = vcombine.high %v2448_v61, %v2452_v62  ;;  %v2497_v51 = vld [vmem:[#allocation6 + $0x1d8] sm:$0xff] }
 0x45b   :  { %v2416_v55 = vadd.f32 %v2415_v54, %v4733_v9  ;;  %v2417_v11 = vpop.f32.mrb[26].mxu1  ;;  %v2457_v9 = vld [vmem:[#allocation6 + $0x98] sm:$0xff] }
 0x45c   :  { %v2432_v56 = vadd.f32 %v2425_v50, %v2414_v53  ;;  %v2418_v57 = vpop.f32.mrb[27].mxu1  ;;  %v3831_v12 = vcombine.high %v2457_v9, %v2461_v5  ;;  %v3830_v18 = vcombine.low %v2457_v9, %v2461_v5  ;;  %v2500_v50 = vld [vmem:[#allocation6 + $0x1f0] sm:$0xff]  ;;  %v3860_v53 = vcombine.low %v2488_v39, %v2492_v40 }
 0x45d   :  { %v2433_v42 = vadd.f32 %v2429_v52, %v2416_v55  ;;  %v2501_v52 = vld [vmem:[#allocation6 + $0x1f8] sm:$0xff]  ;;  %v3869_v55 = vcombine.high %v2496_v48, %v2500_v50  ;;  %v2508_v57 = vld [vmem:[#allocation6 + $0x230] sm:$0xff] }
 0x45e   :  { %v2434_v0 = vmax.f32 %v2432_v56, 0.0  ;;  %v3871_v11 = vcombine.high %v2497_v51, %v2501_v52  ;;  %v2504_v56 = vld [vmem:[#allocation6 + $0x210] sm:$0xff]  ;;  %v3870_v61 = vcombine.low %v2497_v51, %v2501_v52 }
 0x45f   :  { %v2435_v58 = vmax.f32 %v2433_v42, 0.0  ;;  %v2505_v42 = vld [vmem:[#allocation6 + $0x218] sm:$0xff]  ;;  %v3877_v62 = vcombine.high %v2504_v56, %v2508_v57 }
 0x460   :  { %v4837_v3 = vpack.c.bf16 %v2434_v0, %v2434_v0  ;;  %v2509_v0 = vld [vmem:[#allocation6 + $0x238] sm:$0xff] }
 0x461   :  { %v2437_v2 = vpack.c.bf16 %v2435_v58, %v2435_v58  ;;  %v3868_v58 = vcombine.low %v2496_v48, %v2500_v50  ;;  %v3879_v63 = vcombine.high %v2505_v42, %v2509_v0  ;;  %v3878_v60 = vcombine.low %v2505_v42, %v2509_v0 }
 0x463   :  { %3280 = vmatprep.mubr.bf16.mxu1 %v2437_v2  ;;  %3321 = vmatprep.mubr.bf16.mxu0 %v2437_v2 }
 0x464   :  { %3281 = vmatmul.mubr.bf16.vlgmr.msra.gmra.mrb[28].mxu1 %v4837_v3  ;;  %3322 = vmatmul.mubr.bf16.vlgmr.msra.gmra.mrb[20].mxu0 %v4837_v3 }
 0x465   :  { %3331 = vmatpush1.bf16.msra.mxu1 %v3812_v41  ;;  %3372 = vmatpush1.bf16.msra.mxu0 %v3814_v43  ;;  %v2489_v41 = vld [vmem:[#allocation6 + $0x198] sm:$0xff] }
 0x466   :  { %3362 = vmatprep.mubr.bf16.mxu1 %v2437_v2  ;;  %3403 = vmatprep.mubr.bf16.mxu0 %v2437_v2  ;;  %v2493_v43 = vld [vmem:[#allocation6 + $0x1b8] sm:$0xff]  ;;  %v2516_v2 = vld [vmem:[#allocation6 + $0x270] sm:$0xff] }
 0x467   :  { %3332 = vmatprep.subr.bf16.mxu1 %v3821_v8  ;;  %3373 = vmatprep.subr.bf16.mxu0 %v3823_v59  ;;  %v3863_v47 = vcombine.high %v2489_v41, %v2493_v43  ;;  %v3862_v54 = vcombine.low %v2489_v41, %v2493_v43  ;;  %v2517_v8 = vld [vmem:[#allocation6 + $0x278] sm:$0xff]  ;;  %v3876_v59 = vcombine.low %v2504_v56, %v2508_v57 }
 0x468   :  { %v3885_v9 = vcombine.high %v2512_v1, %v2516_v2  ;;  %v3887_v5 = vcombine.high %v2513_v4, %v2517_v8  ;;  %v3884_v13 = vcombine.low %v2512_v1, %v2516_v2  ;;  %v3886_v14 = vcombine.low %v2513_v4, %v2517_v8 }
 0x469   :  { %3333 = vmatpush1.bf16.msra.mxu1 %v3820_v6  ;;  %3374 = vmatpush1.bf16.msra.mxu0 %v3822_v7  ;;  %v2520_v6 = vld [vmem:[#allocation6 + $0x290] sm:$0xff]  ;;  %v2582_v1 = vsub.s32 3, %v4792_v35 }
 0x46a   :  { %3334 = vmatprep.subr.bf16.mxu1 %v3829_v10  ;;  %3375 = vmatprep.subr.bf16.mxu0 %v3831_v12  ;;  %v2524_v7 = vld [vmem:[#allocation6 + $0x2b0] sm:$0xff]  ;;  %v2521_v10 = vld [vmem:[#allocation6 + $0x298] sm:$0xff] }
 0x46b   :  { %v2525_v12 = vld [vmem:[#allocation6 + $0x2b8] sm:$0xff]  ;;  %v3893_v15 = vcombine.high %v2520_v6, %v2524_v7  ;;  %v3892_v22 = vcombine.low %v2520_v6, %v2524_v7 }
 0x46c   :  { %v3895_v16 = vcombine.high %v2521_v10, %v2525_v12  ;;  %v3894_v23 = vcombine.low %v2521_v10, %v2525_v12 }
 0x46d   :  { %3335 = vmatpush1.bf16.msra.mxu1 %v3828_v17  ;;  %3376 = vmatpush1.bf16.msra.mxu0 %v3830_v18  ;;  %v2528_v17 = vld [vmem:[#allocation6 + $0x2d0] sm:$0xff] }
 0x46e   :  { %3336 = vmatprep.subr.bf16.mxu1 %v3837_v19  ;;  %3377 = vmatprep.subr.bf16.mxu0 %v3839_v20  ;;  %v2532_v18 = vld [vmem:[#allocation6 + $0x2f0] sm:$0xff]  ;;  %v2529_v19 = vld [vmem:[#allocation6 + $0x2d8] sm:$0xff] }
 0x46f   :  { %v2533_v20 = vld [vmem:[#allocation6 + $0x2f8] sm:$0xff]  ;;  %v3901_v24 = vcombine.high %v2528_v17, %v2532_v18  ;;  %v3900_v31 = vcombine.low %v2528_v17, %v2532_v18 }
 0x470   :  { %v3903_v25 = vcombine.high %v2529_v19, %v2533_v20  ;;  %v3902_v32 = vcombine.low %v2529_v19, %v2533_v20 }
 0x471   :  { %3337 = vmatpush1.bf16.msra.mxu1 %v3836_v26  ;;  %3378 = vmatpush1.bf16.msra.mxu0 %v3838_v28  ;;  %v2536_v26 = vld [vmem:[#allocation6 + $0x310] sm:$0xff] }
 0x472   :  { %3338 = vmatprep.subr.bf16.mxu1 %v3845_v29  ;;  %3379 = vmatprep.subr.bf16.mxu0 %v3847_v30  ;;  %v2540_v28 = vld [vmem:[#allocation6 + $0x330] sm:$0xff]  ;;  %v2537_v29 = vld [vmem:[#allocation6 + $0x318] sm:$0xff] }
 0x473   :  { %v2541_v30 = vld [vmem:[#allocation6 + $0x338] sm:$0xff]  ;;  %v3909_v21 = vcombine.high %v2536_v26, %v2540_v28  ;;  %v3908_v39 = vcombine.low %v2536_v26, %v2540_v28 }
 0x474   :  { %v3911_v33 = vcombine.high %v2537_v29, %v2541_v30  ;;  %v3910_v40 = vcombine.low %v2537_v29, %v2541_v30 }
 0x475   :  { %3339 = vmatpush1.bf16.msra.mxu1 %v3844_v34  ;;  %3380 = vmatpush1.bf16.msra.mxu0 %v3846_v36  ;;  %v2544_v34 = vld [vmem:[#allocation6 + $0x350] sm:$0xff] }
 0x476   :  { %3340 = vmatprep.subr.bf16.mxu1 %v3853_v37  ;;  %3381 = vmatprep.subr.bf16.mxu0 %v3855_v38  ;;  %v2548_v36 = vld [vmem:[#allocation6 + $0x370] sm:$0xff]  ;;  %v2545_v37 = vld [vmem:[#allocation6 + $0x358] sm:$0xff] }
 0x477   :  { %v2549_v38 = vld [vmem:[#allocation6 + $0x378] sm:$0xff]  ;;  %v3917_v41 = vcombine.high %v2544_v34, %v2548_v36  ;;  %v3916_v48 = vcombine.low %v2544_v34, %v2548_v36  ;;  %v2586_v34 = vsub.s32 4, %v4792_v35  ;;  %v2594_v36 = vsub.s32 6, %v4792_v35 }
 0x478   :  { %v3919_v43 = vcombine.high %v2545_v37, %v2549_v38  ;;  %v3918_v50 = vcombine.low %v2545_v37, %v2549_v38  ;;  %v2590_v37 = vsub.s32 5, %v4792_v35  ;;  %v2598_v38 = vsub.s32 7, %v4792_v35 }
 0x479   :  { %3341 = vmatpush1.bf16.msra.mxu1 %v3852_v44  ;;  %3382 = vmatpush1.bf16.msra.mxu0 %v3854_v45  ;;  %v2552_v44 = vld [vmem:[#allocation6 + $0x390] sm:$0xff] }
 0x47a   :  { %3342 = vmatprep.subr.bf16.mxu1 %v3861_v46  ;;  %3383 = vmatprep.subr.bf16.mxu0 %v3863_v47  ;;  %v2556_v45 = vld [vmem:[#allocation6 + $0x3b0] sm:$0xff]  ;;  %v2553_v46 = vld [vmem:[#allocation6 + $0x398] sm:$0xff] }
 0x47b   :  { %v2557_v47 = vld [vmem:[#allocation6 + $0x3b8] sm:$0xff]  ;;  %v3925_v51 = vcombine.high %v2552_v44, %v2556_v45  ;;  %v3924_v56 = vcombine.low %v2552_v44, %v2556_v45 }
 0x47c   :  { %v3927_v52 = vcombine.high %v2553_v46, %v2557_v47  ;;  %v3926_v57 = vcombine.low %v2553_v46, %v2557_v47 }
 0x47d   :  { %3343 = vmatpush1.bf16.msra.mxu1 %v3860_v53  ;;  %3384 = vmatpush1.bf16.msra.mxu0 %v3862_v54  ;;  %v2560_v53 = vld [vmem:[#allocation6 + $0x3d0] sm:$0xff] }
 0x47e   :  { %3344 = vmatprep.subr.bf16.mxu1 %v3869_v55  ;;  %3385 = vmatprep.subr.bf16.mxu0 %v3871_v11  ;;  %v2564_v54 = vld [vmem:[#allocation6 + $0x3f0] sm:$0xff]  ;;  %v2561_v55 = vld [vmem:[#allocation6 + $0x3d8] sm:$0xff] }
 0x47f   :  { %v2565_v11 = vld [vmem:[#allocation6 + $0x3f8] sm:$0xff]  ;;  %v3933_v42 = vcombine.high %v2560_v53, %v2564_v54 }
 0x480   :  { %v3935_v0 = vcombine.high %v2561_v55, %v2565_v11 }
 0x481   :  { %3345 = vmatpush1.bf16.msra.mxu1 %v3868_v58  ;;  %3386 = vmatpush1.bf16.msra.mxu0 %v3870_v61  ;;  %v3932_v58 = vcombine.low %v2560_v53, %v2564_v54  ;;  %v3934_v61 = vcombine.low %v2561_v55, %v2565_v11 }
 0x482   :  { %3346 = vmatprep.subr.bf16.mxu1 %v3877_v62  ;;  %3387 = vmatprep.subr.bf16.mxu0 %v3879_v63  ;;  %v2578_v62 = vsub.s32 2, %v4792_v35  ;;  %v2566_v63 = vld [vmem:[%s4879_s13] sm:$0xff] }
 0x483   :  { %v2571_v2 = vrot.slane %v2566_v63, %v4795_v27  ;;  %v2575_v8 = vrot.slane %v2566_v63, %v4801_v49 }
 0x484   :  { %v2579_v4 = vrot.slane %v2566_v63, %v2578_v62 }
 0x485   :  { %3347 = vmatpush1.bf16.msra.mxu1 %v3876_v59  ;;  %3388 = vmatpush1.bf16.msra.mxu0 %v3878_v60  ;;  %v2583_v59 = vrot.slane %v2566_v63, %v2582_v1 }
 0x486   :  { %3348 = vmatprep.subr.bf16.mxu1 %v3885_v9  ;;  %3389 = vmatprep.subr.bf16.mxu0 %v3887_v5 }
 0x489   :  { %3349 = vmatpush1.bf16.msra.mxu1 %v3884_v13  ;;  %3390 = vmatpush1.bf16.msra.mxu0 %v3886_v14 }
 0x48a   :  { %3350 = vmatprep.subr.bf16.mxu1 %v3893_v15  ;;  %3391 = vmatprep.subr.bf16.mxu0 %v3895_v16 }
 0x48d   :  { %3351 = vmatpush1.bf16.msra.mxu1 %v3892_v22  ;;  %3392 = vmatpush1.bf16.msra.mxu0 %v3894_v23 }
 0x48e   :  { %3352 = vmatprep.subr.bf16.mxu1 %v3901_v24  ;;  %3393 = vmatprep.subr.bf16.mxu0 %v3903_v25 }
 0x491   :  { %3353 = vmatpush1.bf16.msra.mxu1 %v3900_v31  ;;  %3394 = vmatpush1.bf16.msra.mxu0 %v3902_v32 }
 0x492   :  { %3354 = vmatprep.subr.bf16.mxu1 %v3909_v21  ;;  %3395 = vmatprep.subr.bf16.mxu0 %v3911_v33 }
 0x495   :  { %3355 = vmatpush1.bf16.msra.mxu1 %v3908_v39  ;;  %3396 = vmatpush1.bf16.msra.mxu0 %v3910_v40  ;;  %v2587_v39 = vrot.slane %v2566_v63, %v2586_v34  ;;  %v2595_v40 = vrot.slane %v2566_v63, %v2594_v36 }
 0x496   :  { %3356 = vmatprep.subr.bf16.mxu1 %v3917_v41  ;;  %3397 = vmatprep.subr.bf16.mxu0 %v3919_v43  ;;  %v2591_v41 = vrot.slane %v2566_v63, %v2590_v37  ;;  %v2599_v43 = vrot.slane %v2566_v63, %v2598_v38 }
 0x499   :  { %3357 = vmatpush1.bf16.msra.mxu1 %v3916_v48  ;;  %3398 = vmatpush1.bf16.msra.mxu0 %v3918_v50 }
 0x49a   :  { %3358 = vmatprep.subr.bf16.mxu1 %v3925_v51  ;;  %3399 = vmatprep.subr.bf16.mxu0 %v3927_v52 }
 0x49d   :  { %3359 = vmatpush1.bf16.msra.mxu1 %v3924_v56  ;;  %3400 = vmatpush1.bf16.msra.mxu0 %v3926_v57 }
 0x49e   :  { %3360 = vmatprep.subr.bf16.mxu1 %v3933_v42  ;;  %3401 = vmatprep.subr.bf16.mxu0 %v3935_v0 }
 0x4a1   :  { %3361 = vmatpush1.bf16.msra.mxu1 %v3932_v58  ;;  %3402 = vmatpush1.bf16.msra.mxu0 %v3934_v61 }
 0x4a4   :  { %3363 = vmatmul.mubr.bf16.vlgmr.msra.gmra.mrb[32].mxu1 %v4837_v3  ;;  %3404 = vmatmul.mubr.bf16.vlgmr.msra.gmra.mrb[24].mxu0 %v4837_v3 }
 0x537   :  { %v3282_v60 = vpop.f32.mrb[28].mxu1  ;;  %v3323_v9 = vpop.f32.mrb[20].mxu0 }
 0x538   :  { %v3283_v5 = vadd.f32 %v3282_v60, %v2571_v2  ;;  %v3324_v6 = vadd.f32 %v3323_v9, %v2579_v4  ;;  %v3284_v7 = vpop.f32.mrb[29].mxu1  ;;  %v3325_v3 = vpop.f32.mrb[21].mxu0 }
 0x539   :  { %v3285_v10 = vadd.f32 %v3284_v7, %v2575_v8  ;;  %v3326_v12 = vadd.f32 %v3325_v3, %v2583_v59  ;;  %v3286_v13 = vpop.f32.mrb[30].mxu1  ;;  %v3327_v14 = vpop.f32.mrb[22].mxu0 }
 0x53a   :  { %v3936_v15 = vmul.f32 -1.442695, %v3283_v5  ;;  %v3938_v16 = vmul.f32 -1.442695, %v3324_v6  ;;  %v3287_v17 = vpop.f32.mrb[31].mxu1  ;;  %v3328_v18 = vpop.f32.mrb[23].mxu0 }
 0x53b   :  { %v3937_v19 = vmul.f32 -1.442695, %v3285_v10  ;;  %v3939_v27 = vmul.f32 -1.442695, %v3326_v12 }
 0x53c   :  { %4412 = vpow2.f32 %v3936_v15 }
 0x53d   :  { %4414 = vpow2.f32 %v3938_v16 }
 0x53e   :  { %4416 = vpow2.f32 %v3937_v19 }
 0x53f   :  { %4418 = vpow2.f32 %v3939_v27 }
 0x546   :  { %v4413_v49 = vpop.eup %4412 }
 0x547   :  { %v4415_v20 = vpop.eup %4414  ;;  %v3436_v22 = vadd.f32 1.0, %v4413_v49 }
 0x548   :  { %v4417_v23 = vpop.eup %4416  ;;  %v3438_v24 = vadd.f32 1.0, %v4415_v20 }
 0x549   :  { %v4419_v25 = vpop.eup %4418  ;;  %4420 = vrcp.f32 %v3436_v22  ;;  %v3437_v26 = vadd.f32 1.0, %v4417_v23 }
 0x54a   :  { %4422 = vrcp.f32 %v3438_v24  ;;  %v3439_v28 = vadd.f32 1.0, %v4419_v25 }
 0x54b   :  { %4424 = vrcp.f32 %v3437_v26 }
 0x54c   :  { %4426 = vrcp.f32 %v3439_v28 }
 0x553   :  { %v4421_v29 = vpop.eup %4420 }
 0x554   :  { %v4423_v30 = vpop.eup %4422 }
 0x555   :  { %v4425_v31 = vpop.eup %4424 }
 0x556   :  { %v4427_v32 = vpop.eup %4426  ;;  %v3948_v21 = vpack.c.bf16 %v4425_v31, %v4421_v29 }
 0x557   :  { %v3949_v33 = vpack.c.bf16 %v4427_v32, %v4423_v30 }
 0x558   :  { %3492 = vst [vmem:[%s4880_s14] sm:$0xff] %v3948_v21 }
 0x559   :  { %3493 = vst [vmem:[%s4880_s14 + $0x8] sm:$0xff] %v3949_v33 }
 0x577   :  { %v3364_v44 = vpop.f32.mrb[32].mxu1  ;;  %v3405_v45 = vpop.f32.mrb[24].mxu0 }
 0x578   :  { %v3365_v46 = vadd.f32 %v3364_v44, %v2587_v39  ;;  %v3406_v47 = vadd.f32 %v3405_v45, %v2595_v40  ;;  %v3366_v48 = vpop.f32.mrb[33].mxu1  ;;  %v3407_v50 = vpop.f32.mrb[25].mxu0 }
 0x579   :  { %v3367_v51 = vadd.f32 %v3366_v48, %v2591_v41  ;;  %v3408_v52 = vadd.f32 %v3407_v50, %v2599_v43  ;;  %v3368_v53 = vpop.f32.mrb[34].mxu1  ;;  %v3409_v54 = vpop.f32.mrb[26].mxu0 }
 0x57a   :  { %v3940_v55 = vmul.f32 -1.442695, %v3365_v46  ;;  %v3942_v11 = vmul.f32 -1.442695, %v3406_v47  ;;  %v3369_v56 = vpop.f32.mrb[35].mxu1  ;;  %v3410_v57 = vpop.f32.mrb[27].mxu0 }
 0x57b   :  { %v3941_v42 = vmul.f32 -1.442695, %v3367_v51  ;;  %v3943_v35 = vmul.f32 -1.442695, %v3408_v52 }
 0x57c   :  { %4428 = vpow2.f32 %v3940_v55 }
 0x57d   :  { %4430 = vpow2.f32 %v3942_v11 }
 0x57e   :  { %4432 = vpow2.f32 %v3941_v42 }
 0x57f   :  { %4434 = vpow2.f32 %v3943_v35 }
 0x586   :  { %v4429_v0 = vpop.eup %4428 }
 0x587   :  { %v4431_v58 = vpop.eup %4430  ;;  %v3440_v61 = vadd.f32 1.0, %v4429_v0 }
 0x588   :  { %v4433_v62 = vpop.eup %4432  ;;  %v3442_v63 = vadd.f32 1.0, %v4431_v58 }
 0x589   :  { %v4435_v1 = vpop.eup %4434  ;;  %4436 = vrcp.f32 %v3440_v61  ;;  %v3441_v2 = vadd.f32 1.0, %v4433_v62 }
 0x58a   :  { %4438 = vrcp.f32 %v3442_v63  ;;  %v3443_v4 = vadd.f32 1.0, %v4435_v1 }
 0x58b   :  { %4440 = vrcp.f32 %v3441_v2 }
 0x58c   :  { %4442 = vrcp.f32 %v3443_v4 }
 0x593   :  { %v4437_v8 = vpop.eup %4436 }
 0x594   :  { %v4439_v59 = vpop.eup %4438 }
 0x595   :  { %v4441_v60 = vpop.eup %4440 }
 0x596   :  { %v4443_v9 = vpop.eup %4442  ;;  %v3950_v5 = vpack.c.bf16 %v4441_v60, %v4437_v8 }
 0x597   :  { %v3951_v6 = vpack.c.bf16 %v4443_v9, %v4439_v59 }
 0x598   :  { %3494 = vst [vmem:[%s4880_s14 + $0x10] sm:$0xff] %v3950_v5 }
 0x599   :  { %3495 = vst [vmem:[%s4880_s14 + $0x18] sm:$0xff] %v3951_v6 }
 0x59a   :  { %3504 = vsyncpa [#allocation3], 1 }
 0x59b   :  { %3505 = vsyncpa [#allocation5], 1 }

</bundles_post_ra>
